<compile_context>
chip_gen: v7x
topology: tpu7x:2x2x1
jax: 0.10.0
libtpu: 0.0.40
codegen_flags: <defaults>
</compile_context>

<pallas_src>
import jax
import jax.numpy as jnp
import numpy as np
from jax.experimental import pallas as pl
from jax.experimental.pallas import tpu as pltpu


def _agg_kernel(x1_ref, x2_ref, wf1_ref, wf2_ref, sh1_ref, sh2_ref,
                v1_ref, v2_ref, out_ref):
    """One grid step processes tn2 packed rows (= 2*tn2 original rows)."""
    out2 = out_ref.shape[-1]            # 2 * OUT  (128 lanes for OUT=64)
    out_c = out2 // 2
    c1 = x1_ref.shape[-1] // 2          # original C1
    c2 = x2_ref.shape[-1] // 2          # original C2

    x1 = x1_ref[...]                    # (tn2, 2*C1)  native dtype (f32 / bf16)
    x2 = x2_ref[...]                    # (tn2, 2*C2)

    # Pair-packed projections: block-diagonal, BN-scale-folded weights put the
    # even original row in lanes [0, OUT) and the odd one in [OUT, 2*OUT).
    # f32 accumulation on the MXU regardless of streaming dtype.
    p1 = jnp.maximum(
        jnp.dot(x1, wf1_ref[...], preferred_element_type=jnp.float32)
        + sh1_ref[...], 0.0)            # (tn2, 2*OUT)
    p2 = jnp.maximum(
        jnp.dot(x2, wf2_ref[...], preferred_element_type=jnp.float32)
        + sh2_ref[...], 0.0)            # (tn2, 2*OUT)

    # Gating logits on VPU multiply + XLU lane reduce (no 1-wide MXU matmuls).
    # Kept in f32 even when activations stream as bf16 (v5e has no bf16 VPU/EUP).
    m1 = x1.astype(jnp.float32) * v1_ref[...]            # (tn2, 2*C1)
    m2 = x2.astype(jnp.float32) * v2_ref[...]            # (tn2, 2*C2)
    l1e = jnp.sum(m1[:, :c1], axis=-1, keepdims=True)    # branch-1 logit, even rows
    l1o = jnp.sum(m1[:, c1:], axis=-1, keepdims=True)    # branch-1 logit, odd rows
    l2e = jnp.sum(m2[:, :c2], axis=-1, keepdims=True)    # branch-2 logit, even rows
    l2o = jnp.sum(m2[:, c2:], axis=-1, keepdims=True)    # branch-2 logit, odd rows

    # softmax over the pair [l1, l2]  ==  sigmoid(l1 - l2): one EUP exp each.
    a1e = 1.0 / (1.0 + jnp.exp(l2e - l1e))               # (tn2, 1)
    a1o = 1.0 / (1.0 + jnp.exp(l2o - l1o))               # (tn2, 1)

    # Lane-dense blend: branch-1 gain for even rows in lanes [0, OUT),
    # for odd rows in lanes [OUT, 2*OUT); branch-2 gain is its complement.
    lane = jax.lax.broadcasted_iota(jnp.int32, (1, out2), 1)
    g1 = jnp.where(lane < out_c, a1e, a1o)               # (tn2, 2*OUT)
    out_ref[...] = (g1 * p1 + (1.0 - g1) * p2).astype(out_ref.dtype)


def _choose_tile(n_rows, desired):
    """Tile size in ORIGINAL rows: multiple of 16 (pairing + sublane align),
    shrunk so the grid has >= 4 steps when possible (>= 2 pipelined steps per
    TensorCore when v7x shards the parallel axis across its 2 cores)."""
    tile = max(16, desired - desired % 16)
    while tile > 16 and pl.cdiv(n_rows, tile) < 4:
        tile //= 2
    return max(16, tile)


def aggregation(align_feature, feature, params, *, tile_n=2048,
                out_dtype=jnp.float32):
    """align_feature: (N, C1), feature: (N, C2)  ->  (N, OUT)."""
    N, C1 = align_feature.shape
    N2, C2 = feature.shape
    assert N == N2
    OUT = params["wp1"].shape[1]
    f32 = jnp.float32

    # Stream activations in their native dtype (no wrapper astype => no extra
    # HBM round-trip outside the opaque pallas_call). Unusual dtypes -> f32.
    def _stream(x):
        if x.dtype == jnp.float32 or x.dtype == jnp.bfloat16:
            return x
        return x.astype(f32)
    align_feature = _stream(align_feature)
    feature = _stream(feature)

    # ---- tiling + robust tail handling (pad N up to a tile multiple) -------
    tile = _choose_tile(N, tile_n)
    grid_n = pl.cdiv(N, tile)
    n_pad = grid_n * tile
    if n_pad != N:
        align_feature = jnp.pad(align_feature, ((0, n_pad - N), (0, 0)))
        feature = jnp.pad(feature, ((0, n_pad - N), (0, 0)))

    # ---- pair-pack rows: (N, C) -> (N/2, 2C). Free row-major views; they make
    # the kernel's output block (tile/2, 2*OUT) = 128 lanes (unmasked stores).
    x1p = align_feature.reshape(n_pad // 2, 2 * C1)
    x2p = feature.reshape(n_pad // 2, 2 * C2)

    # ---- fold inference-mode BN scale into the projection weights, then build
    # pair-packed block-diagonal weights and duplicated shift / gating rows.
    w1s = params["wp1"].astype(f32) * params["bn1_scale"].reshape(1, OUT)
    w2s = params["wp2"].astype(f32) * params["bn2_scale"].reshape(1, OUT)
    z1 = jnp.zeros((C1, OUT), f32)
    z2 = jnp.zeros((C2, OUT), f32)
    wf1 = jnp.concatenate(
        [jnp.concatenate([w1s, z1], axis=1),
         jnp.concatenate([z1, w1s], axis=1)], axis=0).astype(x1p.dtype)   # (2C1, 2OUT)
    wf2 = jnp.concatenate(
        [jnp.concatenate([w2s, z2], axis=1),
         jnp.concatenate([z2, w2s], axis=1)], axis=0).astype(x2p.dtype)   # (2C2, 2OUT)
    sh1 = jnp.tile(params["bn1_shift"].reshape(1, OUT).astype(f32), (1, 2))  # (1, 2OUT)
    sh2 = jnp.tile(params["bn2_shift"].reshape(1, OUT).astype(f32), (1, 2))  # (1, 2OUT)
    v1v = jnp.tile(params["v1"].reshape(1, C1).astype(f32), (1, 2))          # (1, 2C1)
    v2v = jnp.tile(params["v2"].reshape(1, C2).astype(f32), (1, 2))          # (1, 2C2)

    tn2 = tile // 2
    grid_spec = pltpu.PrefetchScalarGridSpec(
        num_scalar_prefetch=0,
        grid=(grid_n,),
        in_specs=[
            pl.BlockSpec((tn2, 2 * C1), lambda i: (i, 0)),       # packed align_feature
            pl.BlockSpec((tn2, 2 * C2), lambda i: (i, 0)),       # packed feature
            pl.BlockSpec((2 * C1, 2 * OUT), lambda i: (0, 0)),   # fused W1 (resident)
            pl.BlockSpec((2 * C2, 2 * OUT), lambda i: (0, 0)),   # fused W2 (resident)
            pl.BlockSpec((1, 2 * OUT), lambda i: (0, 0)),        # BN1 shift (dup)
            pl.BlockSpec((1, 2 * OUT), lambda i: (0, 0)),        # BN2 shift (dup)
            pl.BlockSpec((1, 2 * C1), lambda i: (0, 0)),         # v1 row (dup)
            pl.BlockSpec((1, 2 * C2), lambda i: (0, 0)),         # v2 row (dup)
        ],
        out_specs=pl.BlockSpec((tn2, 2 * OUT), lambda i: (i, 0)),
    )

    out_packed = pl.pallas_call(
        _agg_kernel,
        out_shape=jax.ShapeDtypeStruct((n_pad // 2, 2 * OUT), out_dtype),
        grid_spec=grid_spec,
        compiler_params=pltpu.CompilerParams(
            dimension_semantics=("parallel",)),
    )(x1p, x2p, wf1, wf2, sh1, sh2, v1v, v2v)

    out = out_packed.reshape(n_pad, OUT)     # free row-major view back to (N, OUT)
    return out if n_pad == N else out[:N]


def _make_params(key, C1, C2, OUT, eps=1e-3):
    ks = jax.random.split(key, 10)
    # Linear weights (stored as (C_in, C_out) = transposed PyTorch layout)
    wp1 = jax.random.normal(ks[0], (C1, OUT), jnp.float32) * 0.1
    wp2 = jax.random.normal(ks[1], (C2, OUT), jnp.float32) * 0.1
    v1 = jax.random.normal(ks[2], (C1, 1), jnp.float32) * 0.1
    v2 = jax.random.normal(ks[3], (C2, 1), jnp.float32) * 0.1
    # BatchNorm1d(eps=0.001) inference-mode parameters, folded to scale/shift
    gamma1 = 1.0 + 0.1 * jax.random.normal(ks[4], (OUT,), jnp.float32)
    beta1 = 0.1 * jax.random.normal(ks[5], (OUT,), jnp.float32)
    mean1 = 0.1 * jax.random.normal(ks[6], (OUT,), jnp.float32)
    var1 = jnp.abs(1.0 + 0.1 * jax.random.normal(ks[7], (OUT,), jnp.float32))
    gamma2 = 1.0 + 0.1 * jax.random.normal(ks[8], (OUT,), jnp.float32)
    beta2 = 0.1 * jax.random.normal(ks[9], (OUT,), jnp.float32)
    mean2 = jnp.zeros((OUT,), jnp.float32)
    var2 = jnp.ones((OUT,), jnp.float32)

    s1 = gamma1 / jnp.sqrt(var1 + eps)
    sh1 = beta1 - mean1 * s1
    s2 = gamma2 / jnp.sqrt(var2 + eps)
    sh2 = beta2 - mean2 * s2
    return {
        "wp1": wp1, "wp2": wp2, "v1": v1, "v2": v2,
        "bn1_scale": s1.reshape(1, OUT), "bn1_shift": sh1.reshape(1, OUT),
        "bn2_scale": s2.reshape(1, OUT), "bn2_shift": sh2.reshape(1, OUT),
    }


def _reference(align_feature, feature, p):
    p1 = jnp.maximum(align_feature @ p["wp1"] * p["bn1_scale"] + p["bn1_shift"], 0.0)
    p2 = jnp.maximum(feature @ p["wp2"] * p["bn2_scale"] + p["bn2_shift"], 0.0)
    w1 = align_feature @ p["v1"]
    w2 = feature @ p["v2"]
    w = jax.nn.softmax(jnp.concatenate([w1, w2], axis=1), axis=1)
    return w[:, 0:1] * p1 + w[:, 1:2] * p2


if __name__ == "__main__":
    N, C1, C2, OUT = 1024, 32, 48, 64
    key = jax.random.PRNGKey(0)
    k1, k2, kp = jax.random.split(key, 3)
    align_feature = jax.random.normal(k1, (N, C1), jnp.float32)
    feature = jax.random.normal(k2, (N, C2), jnp.float32)
    params = _make_params(kp, C1, C2, OUT)

    # f32 activation path
    out = jax.block_until_ready(aggregation(align_feature, feature, params))
    ref = jax.block_until_ready(_reference(align_feature, feature, params))
    np.testing.assert_allclose(np.asarray(out), np.asarray(ref),
                               rtol=5e-5, atol=2e-5)

    # bf16 activation streaming path (native-dtype inputs, f32 MXU accumulation)
    af_bf = align_feature.astype(jnp.bfloat16)
    f_bf = feature.astype(jnp.bfloat16)
    out_bf = jax.block_until_ready(aggregation(af_bf, f_bf, params))
    ref_bf = _reference(af_bf.astype(jnp.float32), f_bf.astype(jnp.float32), params)
    np.testing.assert_allclose(np.asarray(out_bf), np.asarray(ref_bf),
                               rtol=5e-2, atol=5e-2)

    # ragged N (exercises the wrapper padding / tail handling)
    Nr = 1000
    out_r = jax.block_until_ready(
        aggregation(align_feature[:Nr], feature[:Nr], params))
    np.testing.assert_allclose(np.asarray(out_r), np.asarray(ref[:Nr]),
                               rtol=5e-5, atol=2e-5)

    print("KERNEL_OK")
</pallas_src>

<mosaic_0001>
module attributes {stable_mosaic.version = 11 : i64} {
  func.func @_agg_kernel(%arg0: i32, %arg1: memref<128x64xf32, #tpu.memory_space<vmem>>, %arg2: memref<128x96xf32, #tpu.memory_space<vmem>>, %arg3: memref<64x128xf32, #tpu.memory_space<vmem>>, %arg4: memref<96x128xf32, #tpu.memory_space<vmem>>, %arg5: memref<1x128xf32, #tpu.memory_space<vmem>>, %arg6: memref<1x128xf32, #tpu.memory_space<vmem>>, %arg7: memref<1x64xf32, #tpu.memory_space<vmem>>, %arg8: memref<1x96xf32, #tpu.memory_space<vmem>>, %arg9: memref<128x128xf32, #tpu.memory_space<vmem>>) attributes {dimension_semantics = [#tpu.dimension_semantics<parallel>], iteration_bounds = array<i64: 4>, scalar_prefetch = 0 : i64, scratch_operands = 0 : i64, tpu.core_type = #tpu.core_type<tc>, window_params = [{transform_indices = @transform_0, window_bounds = array<i64: 128, 64>}, {transform_indices = @transform_1, window_bounds = array<i64: 128, 96>}, {pipeline_mode = #tpu.pipeline_mode<synchronous>, transform_indices = @transform_2, window_bounds = array<i64: 64, 128>}, {pipeline_mode = #tpu.pipeline_mode<synchronous>, transform_indices = @transform_3, window_bounds = array<i64: 96, 128>}, {pipeline_mode = #tpu.pipeline_mode<synchronous>, transform_indices = @transform_4, window_bounds = array<i64: 1, 128>}, {pipeline_mode = #tpu.pipeline_mode<synchronous>, transform_indices = @transform_5, window_bounds = array<i64: 1, 128>}, {pipeline_mode = #tpu.pipeline_mode<synchronous>, transform_indices = @transform_6, window_bounds = array<i64: 1, 64>}, {pipeline_mode = #tpu.pipeline_mode<synchronous>, transform_indices = @transform_7, window_bounds = array<i64: 1, 96>}, {transform_indices = @transform_8, window_bounds = array<i64: 128, 128>}]} {
    %c0 = arith.constant 0 : index
    %c0_0 = arith.constant 0 : index
    %0 = vector.load %arg1[%c0, %c0_0] : memref<128x64xf32, #tpu.memory_space<vmem>>, vector<128x64xf32>
    %c0_1 = arith.constant 0 : index
    %c0_2 = arith.constant 0 : index
    %1 = vector.load %arg2[%c0_1, %c0_2] : memref<128x96xf32, #tpu.memory_space<vmem>>, vector<128x96xf32>
    %c0_3 = arith.constant 0 : index
    %c0_4 = arith.constant 0 : index
    %2 = vector.load %arg3[%c0_3, %c0_4] : memref<64x128xf32, #tpu.memory_space<vmem>>, vector<64x128xf32>
    %cst = arith.constant dense<0.000000e+00> : vector<128x128xf32>
    %3 = tpu.matmul %0, %2, %cst {dimension_numbers = #tpu.dot_dimension_numbers<[1], [0], [0], [1], [0, 0, 1, 1], [], []>} : vector<128x64xf32>, vector<64x128xf32>, vector<128x128xf32> -> vector<128x128xf32>
    %c0_5 = arith.constant 0 : index
    %c0_6 = arith.constant 0 : index
    %4 = vector.load %arg5[%c0_5, %c0_6] : memref<1x128xf32, #tpu.memory_space<vmem>>, vector<1x128xf32>
    %5 = vector.broadcast %4 : vector<1x128xf32> to vector<128x128xf32>
    %6 = arith.addf %3, %5 : vector<128x128xf32>
    %cst_7 = arith.constant 0.000000e+00 : f32
    %7 = vector.broadcast %cst_7 : f32 to vector<128x128xf32>
    %8 = arith.maximumf %6, %7 : vector<128x128xf32>
    %c0_8 = arith.constant 0 : index
    %c0_9 = arith.constant 0 : index
    %9 = vector.load %arg4[%c0_8, %c0_9] : memref<96x128xf32, #tpu.memory_space<vmem>>, vector<96x128xf32>
    %cst_10 = arith.constant dense<0.000000e+00> : vector<128x128xf32>
    %10 = tpu.matmul %1, %9, %cst_10 {dimension_numbers = #tpu.dot_dimension_numbers<[1], [0], [0], [1], [0, 0, 1, 1], [], []>} : vector<128x96xf32>, vector<96x128xf32>, vector<128x128xf32> -> vector<128x128xf32>
    %c0_11 = arith.constant 0 : index
    %c0_12 = arith.constant 0 : index
    %11 = vector.load %arg6[%c0_11, %c0_12] : memref<1x128xf32, #tpu.memory_space<vmem>>, vector<1x128xf32>
    %12 = vector.broadcast %11 : vector<1x128xf32> to vector<128x128xf32>
    %13 = arith.addf %10, %12 : vector<128x128xf32>
    %cst_13 = arith.constant 0.000000e+00 : f32
    %14 = vector.broadcast %cst_13 : f32 to vector<128x128xf32>
    %15 = arith.maximumf %13, %14 : vector<128x128xf32>
    %c0_14 = arith.constant 0 : index
    %c0_15 = arith.constant 0 : index
    %16 = vector.load %arg7[%c0_14, %c0_15] : memref<1x64xf32, #tpu.memory_space<vmem>>, vector<1x64xf32>
    %17 = vector.broadcast %16 : vector<1x64xf32> to vector<128x64xf32>
    %18 = arith.mulf %0, %17 : vector<128x64xf32>
    %c0_16 = arith.constant 0 : index
    %c0_17 = arith.constant 0 : index
    %19 = vector.load %arg8[%c0_16, %c0_17] : memref<1x96xf32, #tpu.memory_space<vmem>>, vector<1x96xf32>
    %20 = vector.broadcast %19 : vector<1x96xf32> to vector<128x96xf32>
    %21 = arith.mulf %1, %20 : vector<128x96xf32>
    %22 = vector.extract_strided_slice %18 {offsets = [0, 0], sizes = [128, 32], strides = [1, 1]} : vector<128x64xf32> to vector<128x32xf32>
    %cst_18 = arith.constant dense<0.000000e+00> : vector<128xf32>
    %23 = vector.multi_reduction <add>, %22, %cst_18 [1] : vector<128x32xf32> to vector<128xf32>
    %24 = vector.shape_cast %23 : vector<128xf32> to vector<128x1xf32>
    %25 = vector.extract_strided_slice %18 {offsets = [0, 32], sizes = [128, 32], strides = [1, 1]} : vector<128x64xf32> to vector<128x32xf32>
    %cst_19 = arith.constant dense<0.000000e+00> : vector<128xf32>
    %26 = vector.multi_reduction <add>, %25, %cst_19 [1] : vector<128x32xf32> to vector<128xf32>
    %27 = vector.shape_cast %26 : vector<128xf32> to vector<128x1xf32>
    %28 = vector.extract_strided_slice %21 {offsets = [0, 0], sizes = [128, 48], strides = [1, 1]} : vector<128x96xf32> to vector<128x48xf32>
    %cst_20 = arith.constant dense<0.000000e+00> : vector<128xf32>
    %29 = vector.multi_reduction <add>, %28, %cst_20 [1] : vector<128x48xf32> to vector<128xf32>
    %30 = vector.shape_cast %29 : vector<128xf32> to vector<128x1xf32>
    %31 = vector.extract_strided_slice %21 {offsets = [0, 48], sizes = [128, 48], strides = [1, 1]} : vector<128x96xf32> to vector<128x48xf32>
    %cst_21 = arith.constant dense<0.000000e+00> : vector<128xf32>
    %32 = vector.multi_reduction <add>, %31, %cst_21 [1] : vector<128x48xf32> to vector<128xf32>
    %33 = vector.shape_cast %32 : vector<128xf32> to vector<128x1xf32>
    %34 = arith.subf %30, %24 : vector<128x1xf32>
    %35 = math.exp %34 : vector<128x1xf32>
    %cst_22 = arith.constant 1.000000e+00 : f32
    %36 = vector.broadcast %cst_22 : f32 to vector<128x1xf32>
    %37 = arith.addf %36, %35 : vector<128x1xf32>
    %cst_23 = arith.constant 1.000000e+00 : f32
    %38 = vector.broadcast %cst_23 : f32 to vector<128x1xf32>
    %39 = arith.divf %38, %37 : vector<128x1xf32>
    %40 = arith.subf %33, %27 : vector<128x1xf32>
    %41 = math.exp %40 : vector<128x1xf32>
    %cst_24 = arith.constant 1.000000e+00 : f32
    %42 = vector.broadcast %cst_24 : f32 to vector<128x1xf32>
    %43 = arith.addf %42, %41 : vector<128x1xf32>
    %cst_25 = arith.constant 1.000000e+00 : f32
    %44 = vector.broadcast %cst_25 : f32 to vector<128x1xf32>
    %45 = arith.divf %44, %43 : vector<128x1xf32>
    %46 = tpu.iota {dimensions = array<i32: 1>} : vector<1x128xi32>
    %c64_i32 = arith.constant 64 : i32
    %47 = vector.broadcast %c64_i32 : i32 to vector<1x128xi32>
    %48 = arith.cmpi slt, %46, %47 : vector<1x128xi32>
    %49 = vector.shape_cast %48 : vector<1x128xi1> to vector<1x128xi1>
    %50 = vector.broadcast %49 : vector<1x128xi1> to vector<128x128xi1>
    %51 = vector.shape_cast %39 : vector<128x1xf32> to vector<128x1xf32>
    %52 = vector.broadcast %51 : vector<128x1xf32> to vector<128x128xf32>
    %53 = vector.shape_cast %45 : vector<128x1xf32> to vector<128x1xf32>
    %54 = vector.broadcast %53 : vector<128x1xf32> to vector<128x128xf32>
    %55 = arith.select %50, %52, %54 : vector<128x128xi1>, vector<128x128xf32>
    %56 = arith.mulf %55, %8 : vector<128x128xf32>
    %cst_26 = arith.constant 1.000000e+00 : f32
    %57 = vector.broadcast %cst_26 : f32 to vector<128x128xf32>
    %58 = arith.subf %57, %55 : vector<128x128xf32>
    %59 = arith.mulf %58, %15 : vector<128x128xf32>
    %60 = arith.addf %56, %59 : vector<128x128xf32>
    %c0_27 = arith.constant 0 : index
    %c0_28 = arith.constant 0 : index
    %61 = vector.load %arg9[%c0_27, %c0_28] : memref<128x128xf32, #tpu.memory_space<vmem>>, vector<128x128xf32>
    tpu.vector_store %arg9[%c0_27, %c0_28], %60 {strides = array<i32>} : memref<128x128xf32, #tpu.memory_space<vmem>>, vector<128x128xf32>,
    return
  }
  func.func @transform_0(%arg0: i32) -> (i32, i32) {
    %c0_i32 = arith.constant 0 : i32
    %c0_i32_0 = arith.constant 0 : i32
    return %arg0, %c0_i32 : i32, i32
  }
  func.func @transform_1(%arg0: i32) -> (i32, i32) {
    %c0_i32 = arith.constant 0 : i32
    %c0_i32_0 = arith.constant 0 : i32
    return %arg0, %c0_i32 : i32, i32
  }
  func.func @transform_2(%arg0: i32) -> (i32, i32) {
    %c0_i32 = arith.constant 0 : i32
    %c0_i32_0 = arith.constant 0 : i32
    %c0_i32_1 = arith.constant 0 : i32
    return %c0_i32, %c0_i32_0 : i32, i32
  }
  func.func @transform_3(%arg0: i32) -> (i32, i32) {
    %c0_i32 = arith.constant 0 : i32
    %c0_i32_0 = arith.constant 0 : i32
    %c0_i32_1 = arith.constant 0 : i32
    return %c0_i32, %c0_i32_0 : i32, i32
  }
  func.func @transform_4(%arg0: i32) -> (i32, i32) {
    %c0_i32 = arith.constant 0 : i32
    %c0_i32_0 = arith.constant 0 : i32
    %c0_i32_1 = arith.constant 0 : i32
    return %c0_i32, %c0_i32_0 : i32, i32
  }
  func.func @transform_5(%arg0: i32) -> (i32, i32) {
    %c0_i32 = arith.constant 0 : i32
    %c0_i32_0 = arith.constant 0 : i32
    %c0_i32_1 = arith.constant 0 : i32
    return %c0_i32, %c0_i32_0 : i32, i32
  }
  func.func @transform_6(%arg0: i32) -> (i32, i32) {
    %c0_i32 = arith.constant 0 : i32
    %c0_i32_0 = arith.constant 0 : i32
    %c0_i32_1 = arith.constant 0 : i32
    return %c0_i32, %c0_i32_0 : i32, i32
  }
  func.func @transform_7(%arg0: i32) -> (i32, i32) {
    %c0_i32 = arith.constant 0 : i32
    %c0_i32_0 = arith.constant 0 : i32
    %c0_i32_1 = arith.constant 0 : i32
    return %c0_i32, %c0_i32_0 : i32, i32
  }
  func.func @transform_8(%arg0: i32) -> (i32, i32) {
    %c0_i32 = arith.constant 0 : i32
    %c0_i32_0 = arith.constant 0 : i32
    return %arg0, %c0_i32 : i32, i32
  }
}

</mosaic_0001>

<bundles_post_ra>
// kernel: tpu_custom_call.1
= control target key start
LH: loop header
LB: loop body
LE: loop exit
PB: predicated region body
PF: predicated region fallthrough
CT: control target
= control target key end

     0   :  { %13 = vsyncpa [#allocation3], 0  ;;  %s3090_s0 = inlined_call_operand.vmem [shape: f32[512,64], index: 0, kind: input, shape index: {}]   ;;  %s3091_s1 = inlined_call_operand.vmem [shape: f32[512,96], index: 1, kind: input, shape index: {}]   ;;  %s3092_s2 = inlined_call_operand.vmem [shape: f32[64,128], index: 2, kind: input, shape index: {}]   ;;  %s3093_s3 = inlined_call_operand.vmem [shape: f32[96,128], index: 3, kind: input, shape index: {}]   ;;  %s3094_s4 = inlined_call_operand.vmem [shape: f32[1,128], index: 4, kind: input, shape index: {}]   ;;  %s3095_s5 = inlined_call_operand.vmem [shape: f32[1,128], index: 5, kind: input, shape index: {}]   ;;  %s3096_s6 = inlined_call_operand.vmem [shape: f32[1,64], index: 6, kind: input, shape index: {}]   ;;  %s3097_s7 = inlined_call_operand.vmem [shape: f32[1,96], index: 7, kind: input, shape index: {}]   ;;  %s3098_s8 = inlined_call_operand.hbm [shape: f32[512,128], index: 8, kind: output, shape index: {}]  }
   0x1   :  { %15 = vsyncpa [#allocation3 + $0x1], 0  ;;  %s2092_s27 = smov 0   ;;  %s2094_s28 = smov 0  }
   0x2   :  { %s2096_s29 = smov 0   ;;  %s2098_s30 = smov 0  }
   0x3 LB: > { %s2113_s9 = sadd.s32 4294967295, %s2040_s30   ;;  %s1564_s10 = sadd.s32 4294967294, %s2040_s30   ;;  %s2040_s30 = sphi %s2098_s30, %s3152_s30   ;;  %s2036_s29 = sphi %s2096_s29, %s3151_s29   ;;  %s2032_s28 = sphi %s2094_s28, %s3150_s28   ;;  %s2028_s27 = sphi %s2092_s27, %s3149_s27  }
   0x4   : > { %s2117_s11 = sadd.s32 1, %s2040_s30   ;;  %s206_s12 = sadd.s32 1, %s2036_s29 }
   0x5   : > { %s203_s13 = ssub.s32 %s2040_s30, %s2117_s11  ;;  %p216_p0 = scmp.ne.s32.totalorder %s2036_s29, %s2032_s28 }
   0x6   : > { %p204_p1 = scmp.eq.s32.totalorder %s203_s13, 0  ;;  %p217_p2 = scmp.eq.s32.totalorder %s2113_s9, 3 }
   0x7   : > { %p222_p3 = scmp.ne.s32.totalorder %s2032_s28, %s2028_s27  ;;  %p223_p4 = scmp.eq.s32.totalorder %s1564_s10, 3 }
   0x8   : > { %s2128_s14 = scalar_select %p204_p1, %s2036_s29, %s206_s12  }
   0x9   : > { %p2130_p5 = por %p217_p2, %p216_p0  ;;  %p2134_p6 = por %p223_p4, %p222_p3 }
   0xa   : > { %p1567_p7 = scmp.ge.s32.totalorder %s2040_s30, 1  ;;  %p277_p8 = scmp.lt.s32.totalorder %s2040_s30, 5 }
   0xc   : > { %p278_p9 = pnand %p1567_p7, %p277_p8 }
   0xe   : > { %281 = sbr.rel (%p278_p9) target bundleno = 501 (0x1f5), region = 52 }
  0x15   : > { %s1569_s17 = sshll.u32 %s2113_s9, 4  ;;  %v1607_v0 = vld [vmem:[%s3096_s6] ss:$0 sm:$0xff]  ;;  %vm861_vm0 = vcmask 261120   ;;  %v362_v45 = vld [vmem:[%s3092_s2 + $0x8] sm:$0xff]  ;;  %v363_v50 = vld [vmem:[%s3092_s2 + $0x10] sm:$0xff] }
  0x16   : > { %p317_p10 = scmp.lt.s32.totalorder %s1569_s17, 63  ;;  %v361_v44 = vld [vmem:[%s3092_s2] sm:$0xff]  ;;  %v364_v51 = vld [vmem:[%s3092_s2 + $0x18] sm:$0xff]  ;;  %v366_v56 = vld [vmem:[%s3092_s2 + $0x28] sm:$0xff]  ;;  %vm376_vm1 = vcmask 523264   ;;  %s2042_s22 = smov 96  }
  0x17   : > { %v1755_v49 = vpack.c.bf16 %v362_v45, %v361_v44  ;;  %v1759_v54 = vpack.c.bf16 %v364_v51, %v363_v50  ;;  %v365_v55 = vld [vmem:[%s3092_s2 + $0x20] sm:$0xff]  ;;  %v367_v58 = vld [vmem:[%s3092_s2 + $0x30] sm:$0xff]  ;;  %v368_v59 = vld [vmem:[%s3092_s2 + $0x38] sm:$0xff]  ;;  %vm605_vm2 = vcmask 785408   ;;  %s2043_s26 = smov 80   ;;  %vm1022_vm3 = vcmask 392192  }
  0x18   : > { %s3154_s17 = smov (!%p317_p10, %s1569_s17), 63  ;;  %v1763_v57 = vpack.c.bf16 %v366_v56, %v365_v55  ;;  %v1767_v60 = vpack.c.bf16 %v368_v59, %v367_v58  ;;  %v586_v61 = vld [vmem:[%s3093_s3] sm:$0xff]  ;;  %v587_v62 = vld [vmem:[%s3093_s3 + $0x8] sm:$0xff]  ;;  %s313_s19 = sand.u32 1, %s2032_s28  }
  0x19   : > { %s1570_s18 = sshll.u32 %s3154_s17, 3  ;;  %1756 = vmatprep.subr.bf16.mxu0 %v1755_v49  ;;  %v1771_v63 = vpack.c.bf16 %v587_v62, %v586_v61  ;;  %s2912_s20 = sshll.u32 %s313_s19, 7 }
  0x1a   : > { %s2152_s23 = scalar_lea.vmem %s3090_s0, %s1570_s18  ;;  %1758 = vmatpush3.bf16.msra.mxu0 %v1755_v49  ;;  %s2399_s25 = scalar_lea.vmem %s3091_s1, %s1570_s18 }
  0x1b   : > { %v2155_v1 = vld [vmem:[%s2152_s23 + $0x10] sm:$0xff]  ;;  %v2158_v2 = vld [vmem:[%s2152_s23] sm:$0xff]  ;;  %v2161_v3 = vld [vmem:[%s2152_s23 + $0x18] sm:$0xff]  ;;  %1760 = vmatprep.subr.bf16.mxu0 %v1759_v54  ;;  %1795 = vmatprep.subr.bf16.mxu1 %v1771_v63  ;;  %s2937_s21 = scalar_lea.vmem [#allocation2], %s2912_s20 }
  0x1c   : > { %v2164_v4 = vmul.f32 %v1607_v0, %v2155_v1  ;;  %v2167_v5 = vmul.f32 %v1607_v0, %v2158_v2  ;;  %v2170_v6 = vmul.f32 %v1607_v0, %v2161_v3  ;;  %v2173_v7 = vld [vmem:[%s2152_s23 + $0x8] sm:$0xff]  ;;  %v2182_v10 = vld [vmem:[%s2152_s23 + $0x20] sm:$0xff]  ;;  %v2199_v17 = vld [vmem:[%s2152_s23 + $0x38] sm:$0xff]  ;;  %1683 = vmatprep.mubr.msk.f32.mxu0 %vm376_vm1, %v2158_v2  ;;  %1801 = vmatpush3.bf16.msra.mxu1 %v1771_v63  ;;  %s1490_s24 = sshll.u32 %s2937_s21, 4  ;;  %s3044_s24 = int_to_ptr.vmem [resolvable:$true] %s1490_s24 }
  0x1d   : > { %v2176_v8 = vmul.f32 %v1607_v0, %v2173_v7  ;;  %v2179_v9 = vld [vmem:[%s2152_s23 + $0x28] sm:$0xff]  ;;  %v2196_v16 = vmul.f32 %v1607_v0, %v2182_v10  ;;  %v2202_v18 = vld [vmem:[%s2152_s23 + $0x30] sm:$0xff]  ;;  %v2209_v21 = vmul.f32 %v1607_v0, %v2199_v17  ;;  %v2218_v24 = vld [vmem:[%s2152_s23 + $0x40] sm:$0xff] }
  0x1e   : > { %v868_v11 = vsel %vm861_vm0, %v2164_v4, 0.0  ;;  %v862_v12 = vsel %vm861_vm0, %v2167_v5, 0.0  ;;  %v871_v13 = vsel %vm861_vm0, %v2170_v6, 0.0  ;;  %v2193_v15 = vmul.f32 %v1607_v0, %v2179_v9  ;;  %v2215_v23 = vld [vmem:[%s2152_s23 + $0x48] sm:$0xff]  ;;  %v2231_v29 = vld [vmem:[%s2152_s23 + $0x58] sm:$0xff]  ;;  %v2234_v30 = vld [vmem:[%s2152_s23 + $0x50] sm:$0xff]  ;;  %1762 = vmatpush3.bf16.msra.mxu0 %v1759_v54 }
  0x1f   : > { %869 = vadd.xlane.f32.xlu1 %v868_v11  ;;  %863 = vadd.xlane.f32.xlu0 %v862_v12  ;;  %v865_v14 = vsel %vm861_vm0, %v2176_v8, 0.0  ;;  %v874_v20 = vsel %vm861_vm0, %v2196_v16, 0.0  ;;  %v2212_v22 = vmul.f32 %v1607_v0, %v2202_v18  ;;  %v883_v25 = vsel %vm861_vm0, %v2209_v21, 0.0  ;;  %v2247_v35 = vld [vmem:[%s2152_s23 + $0x68] sm:$0xff]  ;;  %v2250_v36 = vld [vmem:[%s2152_s23 + $0x60] sm:$0xff]  ;;  %v2263_v41 = vld [vmem:[%s2152_s23 + $0x78] sm:$0xff] }
  0x20   : > { %v877_v19 = vsel %vm861_vm0, %v2193_v15, 0.0  ;;  %v2225_v27 = vmul.f32 %v1607_v0, %v2215_v23  ;;  %v2228_v28 = vmul.f32 %v1607_v0, %v2218_v24  ;;  %v2241_v33 = vmul.f32 %v1607_v0, %v2231_v29  ;;  %v2266_v42 = vld [vmem:[%s2152_s23 + $0x70] sm:$0xff]  ;;  %1764 = vmatprep.subr.bf16.mxu0 %v1763_v57  ;;  %s1614_s23 = sshll.u32 %s2113_s9, 11  ;;  %s1978_s9 = scalar_lea.vmem %s3044_s24, 2048 }
  0x21   : > { %v880_v26 = vsel %vm861_vm0, %v2212_v22, 0.0  ;;  %v2244_v34 = vmul.f32 %v1607_v0, %v2234_v30  ;;  %v2257_v39 = vmul.f32 %v1607_v0, %v2247_v35  ;;  %v2260_v40 = vmul.f32 %v1607_v0, %v2250_v36  ;;  %v596_v12 = vld [vmem:[%s3093_s3 + $0x50] sm:$0xff]  ;;  %s3042_s18 = scalar_lea.hbm %s3098_s8, %s1614_s23  ;;  %p1979_p11 = scmp.ne.s32.totalorder %s3044_s24, %s1978_s9 }
  0x22   : > { %v889_v31 = vsel %vm861_vm0, %v2225_v27, 0.0  ;;  %v886_v32 = vsel %vm861_vm0, %v2228_v28, 0.0  ;;  %v895_v37 = vsel %vm861_vm0, %v2241_v33, 0.0  ;;  %v2269_v43 = vmul.f32 %v1607_v0, %v2263_v41  ;;  %1766 = vmatpush3.bf16.msra.mxu0 %v1763_v57 }
  0x23   : > { %872 = vadd.xlane.f32.xlu1 %v871_v13  ;;  %866 = vadd.xlane.f32.xlu0 %v865_v14  ;;  %v892_v38 = vsel %vm861_vm0, %v2244_v34, 0.0  ;;  %v901_v46 = vsel %vm861_vm0, %v2257_v39, 0.0  ;;  %v898_v47 = vsel %vm861_vm0, %v2260_v40, 0.0  ;;  %v2282_v48 = vmul.f32 %v1607_v0, %v2266_v42  ;;  %v588_v0 = vld [vmem:[%s3093_s3 + $0x10] sm:$0xff]  ;;  %v597_v13 = vld [vmem:[%s3093_s3 + $0x58] sm:$0xff]  ;;  %p1980_p12 = pnand %p1979_p11, %p2130_p5 }
  0x24   : > { %v907_v52 = vsel %vm861_vm0, %v2269_v43, 0.0  ;;  %1768 = vmatprep.subr.bf16.mxu0 %v1767_v60  ;;  %v1791_v14 = vpack.c.bf16 %v597_v13, %v596_v12 }
  0x25   : > { %v904_v53 = vsel %vm861_vm0, %v2282_v48, 0.0  ;;  %p1981_p13 = pneg %p1980_p12 }
  0x26   : > { %1770 = vmatpush3.bf16.msra.mxu0 %v1767_v60 }
  0x27   : > { %878 = vadd.xlane.f32.xlu1 %v877_v19  ;;  %875 = vadd.xlane.f32.xlu0 %v874_v20  ;;  %v349_v19 = vld [vmem:[%s2399_s25 + $0x20] sm:$0xff] }
  0x28   : > { %1772 = vmatprep.subr.bf16.mxu0 %v1771_v63  ;;  %v1608_v20 = vld [vmem:[%s3097_s7] ss:$0 sm:$0xff] }
  0x29   : > { %1684 = vmatmul.mubr.msk.f32.vlgmr.msra.gmra.mrb[0].mxu0 %vm376_vm1, %v2173_v7  ;;  %v592_v7 = vld [vmem:[%s3093_s3 + $0x30] sm:$0xff] }
  0x2a   : > { %1686 = vmatprep.mubr.msk.f32.mxu0 %vm376_vm1, %v2155_v1  ;;  %v589_v1 = vld [vmem:[%s3093_s3 + $0x18] sm:$0xff]  ;;  %1774 = vmatpush3.bf16.msra.mxu0 %v1771_v63 }
  0x2b   : > { %884 = vadd.xlane.f32.xlu1 %v883_v25  ;;  %881 = vadd.xlane.f32.xlu0 %v880_v26  ;;  %v1775_v2 = vpack.c.bf16 %v589_v1, %v588_v0  ;;  %v352_v26 = vld [vmem:[%s2399_s25 + $0x38] sm:$0xff] }
  0x2d   : > { %1687 = vmatmul.mubr.msk.f32.gmra.mrb[2].mxu0 %vm376_vm1, %v2161_v3  ;;  %1776 = vmatprep.subr.bf16.mxu0 %v1775_v2  ;;  %v590_v3 = vld [vmem:[%s3093_s3 + $0x20] sm:$0xff] }
  0x2e   : > { %1689 = vmatprep.mubr.msk.f32.mxu0 %vm376_vm1, %v2182_v10  ;;  %1796 = vmatprep.subr.bf16.mxu1 %v1775_v2  ;;  %v595_v10 = vld [vmem:[%s3093_s3 + $0x48] sm:$0xff] }
  0x2f   : > { %890 = vadd.xlane.f32.xlu1 %v889_v31  ;;  %887 = vadd.xlane.f32.xlu0 %v886_v32  ;;  %v355_v31 = vld [vmem:[%s2399_s25 + $0x50] sm:$0xff] }
  0x30   : > { %1802 = vmatpush3.bf16.msra.mxu1 %v1775_v2  ;;  %1778 = vmatpush3.bf16.msra.mxu0 %v1775_v2 }
  0x31   : > { %1690 = vmatmul.mubr.msk.f32.gmra.mrb[4].mxu0 %vm376_vm1, %v2179_v9  ;;  %v594_v9 = vld [vmem:[%s3093_s3 + $0x40] sm:$0xff] }
  0x32   : > { %1692 = vmatprep.mubr.msk.f32.mxu0 %vm376_vm1, %v2202_v18  ;;  %v1787_v11 = vpack.c.bf16 %v595_v10, %v594_v9  ;;  %v348_v18 = vld [vmem:[%s2399_s25 + $0x18] sm:$0xff] }
  0x33   : > { %896 = vadd.xlane.f32.xlu1 %v895_v37  ;;  %893 = vadd.xlane.f32.xlu0 %v892_v38  ;;  %v358_v38 = vld [vmem:[%s2399_s25 + $0x68] sm:$0xff] }
  0x34   : > { %v2498_v45 = vmul.f32 %v1608_v20, %v358_v38 }
  0x35   : > { %1693 = vmatmul.mubr.msk.f32.gmra.mrb[6].mxu0 %vm376_vm1, %v2199_v17  ;;  %v346_v17 = vld [vmem:[%s2399_s25 + $0x8] sm:$0xff] }
  0x36   : > { %1695 = vmatprep.mubr.msk.f32.mxu0 %vm376_vm1, %v2218_v24  ;;  %v2431_v24 = vmul.f32 %v1608_v20, %v346_v17 }
  0x37   : > { %902 = vadd.xlane.f32.xlu1 %v901_v46  ;;  %899 = vadd.xlane.f32.xlu0 %v898_v47 }
  0x39   : > { %1696 = vmatmul.mubr.msk.f32.gmra.mrb[8].mxu0 %vm376_vm1, %v2215_v23  ;;  %v351_v23 = vld [vmem:[%s2399_s25 + $0x30] sm:$0xff] }
  0x3a   : > { %1698 = vmatprep.mubr.msk.f32.mxu0 %vm376_vm1, %v2234_v30  ;;  %v354_v30 = vld [vmem:[%s2399_s25 + $0x48] sm:$0xff] }
  0x3b   : > { %908 = vadd.xlane.f32.xlu1 %v907_v52  ;;  %905 = vadd.xlane.f32.xlu0 %v904_v53 }
  0x3d   : > { %1699 = vmatmul.mubr.msk.f32.gmra.mrb[10].mxu0 %vm376_vm1, %v2231_v29  ;;  %v2448_v29 = vmul.f32 %v1608_v20, %v349_v19 }
  0x3e   : > { %1701 = vmatprep.mubr.msk.f32.mxu0 %vm376_vm1, %v2250_v36  ;;  %v2467_v36 = vmul.f32 %v1608_v20, %v352_v26 }
  0x41   : > { %1702 = vmatmul.mubr.msk.f32.gmra.mrb[12].mxu0 %vm376_vm1, %v2247_v35  ;;  %v357_v35 = vld [vmem:[%s2399_s25 + $0x60] sm:$0xff] }
  0x42   : > { %1704 = vmatprep.mubr.msk.f32.mxu0 %vm376_vm1, %v2266_v42  ;;  %v360_v42 = vld [vmem:[%s2399_s25 + $0x78] sm:$0xff]  ;;  %v2494_v44 = vmul.f32 %v1608_v20, %v357_v35 }
  0x43   : > { %v2506_v47 = vmul.f32 %v1608_v20, %v360_v42 }
  0x45   : > { %1705 = vmatmul.mubr.msk.f32.gmra.mrb[14].mxu0 %vm376_vm1, %v2263_v41  ;;  %v2484_v41 = vmul.f32 %v1608_v20, %v355_v31 }
  0x4c   : > { %928 = vrot.lane.b32.xlu1 %v2176_v8, %s2042_s22 }
  0x50   : > { %930 = vrot.lane.b32.xlu1 %v2164_v4, %s2042_s22  ;;  %v591_v4 = vld [vmem:[%s3093_s3 + $0x28] sm:$0xff] }
  0x51   : > { %926 = vrot.lane.b32.xlu0 %v2167_v5, %s2042_s22  ;;  %v1779_v5 = vpack.c.bf16 %v591_v4, %v590_v3 }
  0x53   : > { %1780 = vmatprep.subr.bf16.mxu0 %v1779_v5  ;;  %1797 = vmatprep.subr.bf16.mxu1 %v1779_v5 }
  0x54   : > { %932 = vrot.lane.b32.xlu1 %v2170_v6, %s2042_s22  ;;  %1803 = vmatpush3.bf16.msra.mxu1 %v1779_v5  ;;  %v593_v6 = vld [vmem:[%s3093_s3 + $0x38] sm:$0xff] }
  0x55   : > { %934 = vrot.lane.b32.xlu0 %v2196_v16, %s2042_s22  ;;  %1782 = vmatpush3.bf16.msra.mxu0 %v1779_v5  ;;  %v1783_v8 = vpack.c.bf16 %v593_v6, %v592_v7  ;;  %v347_v16 = vld [vmem:[%s2399_s25 + $0x10] sm:$0xff] }
  0x56   : > { %1734 = vmatprep.mubr.msk.f32.mxu1 %vm605_vm2, %v347_v16  ;;  %v2436_v25 = vmul.f32 %v1608_v20, %v347_v16 }
  0x57   : > { %1784 = vmatprep.subr.bf16.mxu0 %v1783_v8  ;;  %1798 = vmatprep.subr.bf16.mxu1 %v1783_v8 }
  0x58   : > { %936 = vrot.lane.b32.xlu1 %v2193_v15, %s2042_s22  ;;  %1804 = vmatpush3.bf16.msra.mxu1 %v1783_v8  ;;  %v345_v15 = vld [vmem:[%s2399_s25] sm:$0xff] }
  0x59   : > { %938 = vrot.lane.b32.xlu0 %v2212_v22, %s2042_s22  ;;  %1786 = vmatpush3.bf16.msra.mxu0 %v1783_v8  ;;  %v350_v22 = vld [vmem:[%s2399_s25 + $0x28] sm:$0xff] }
  0x5a   : > { %1788 = vmatprep.subr.bf16.mxu0 %v1787_v11  ;;  %1799 = vmatprep.subr.bf16.mxu1 %v1787_v11  ;;  %v2455_v32 = vmul.f32 %v1608_v20, %v350_v22 }
  0x5b   : > { %1731 = vmatprep.mubr.msk.f32.mxu0 %vm605_vm2, %v345_v15 }
  0x5c   : > { %940 = vrot.lane.b32.xlu1 %v2209_v21, %s2042_s22  ;;  %1805 = vmatpush3.bf16.msra.mxu1 %v1787_v11  ;;  %v2424_v21 = vmul.f32 %v1608_v20, %v345_v15 }
  0x5d   : > { %942 = vrot.lane.b32.xlu0 %v2228_v28, %s2042_s22  ;;  %1790 = vmatpush3.bf16.msra.mxu0 %v1787_v11  ;;  %v2443_v28 = vmul.f32 %v1608_v20, %v348_v18 }
  0x5e   : > { %1792 = vmatprep.subr.bf16.mxu0 %v1791_v14  ;;  %1800 = vmatprep.subr.bf16.mxu1 %v1791_v14 }
  0x60   : > { %944 = vrot.lane.b32.xlu1 %v2225_v27, %s2042_s22  ;;  %1806 = vmatpush3.bf16.msra.mxu1 %v1791_v14  ;;  %v353_v27 = vld [vmem:[%s2399_s25 + $0x40] sm:$0xff] }
  0x61   : > { %946 = vrot.lane.b32.xlu0 %v2244_v34, %s2042_s22  ;;  %1794 = vmatpush3.bf16.msra.mxu0 %v1791_v14  ;;  %v356_v34 = vld [vmem:[%s2399_s25 + $0x58] sm:$0xff]  ;;  %v2472_v37 = vmul.f32 %v1608_v20, %v353_v27 }
  0x63   : > { %1735 = vmatmul.mubr.msk.f32.vlgmr.msra.gmra.mrb[0].mxu1 %vm605_vm2, %v348_v18 }
  0x64   : > { %948 = vrot.lane.b32.xlu1 %v2241_v33, %s2042_s22  ;;  %1732 = vmatmul.mubr.msk.f32.vlgmr.msra.gmra.mrb[16].mxu0 %vm605_vm2, %v346_v17  ;;  %v2460_v33 = vmul.f32 %v1608_v20, %v351_v23 }
  0x65   : > { %950 = vrot.lane.b32.xlu0 %v2260_v40, %s2042_s22  ;;  %1737 = vmatprep.mubr.msk.f32.mxu1 %vm605_vm2, %v349_v19  ;;  %v2479_v40 = vmul.f32 %v1608_v20, %v354_v30 }
  0x67   : > { %1738 = vmatmul.mubr.msk.f32.gmra.mrb[2].mxu1 %vm605_vm2, %v350_v22 }
  0x68   : > { %952 = vrot.lane.b32.xlu1 %v2257_v39, %s2042_s22  ;;  %1740 = vmatprep.mubr.msk.f32.mxu1 %vm605_vm2, %v351_v23  ;;  %v359_v39 = vld [vmem:[%s2399_s25 + $0x70] sm:$0xff] }
  0x69   : > { %954 = vrot.lane.b32.xlu0 %v2282_v48, %s2042_s22  ;;  %v2502_v46 = vmul.f32 %v1608_v20, %v359_v39 }
  0x6b   : > { %1741 = vmatmul.mubr.msk.f32.gmra.mrb[4].mxu1 %vm605_vm2, %v352_v26 }
  0x6c   : > { %956 = vrot.lane.b32.xlu1 %v2269_v43, %s2042_s22  ;;  %1743 = vmatprep.mubr.msk.f32.mxu1 %vm605_vm2, %v353_v27  ;;  %v2490_v43 = vmul.f32 %v1608_v20, %v356_v34  ;;  %s2044_s22 = smov [#allocation2]  }
  0x6d   : > { %1087 = vrot.lane.b32.xlu0 %v2424_v21, %s2043_s26  ;;  %s1982_s10 = sshll.u32 %s2044_s22, 4  ;;  %s1983_s10 = int_to_ptr.vmem [resolvable:$false] %s1982_s10 }
  0x6e   : > { %s1984_s12 = scalar_lea.vmem %s1983_s10, 4096  ;;  %p1985_p0 = scmp.lt.s32.totalorder %s3044_s24, %s1983_s10 }
  0x6f   : > { %1744 = vmatmul.mubr.msk.f32.gmra.mrb[6].mxu1 %vm605_vm2, %v354_v30  ;;  %p1986_p1 = scmp.lt.s32.totalorder %s1984_s12, %s1978_s9 }
  0x70   : > { %1089 = vrot.lane.b32.xlu1 %v2431_v24, %s2043_s26  ;;  %1746 = vmatprep.mubr.msk.f32.mxu1 %vm605_vm2, %v355_v31 }
  0x71   : > { %1091 = vrot.lane.b32.xlu0 %v2436_v25, %s2043_s26  ;;  %p1987_p2 = por %p1986_p1, %p1985_p0 }
  0x73   : > { %1747 = vmatmul.mubr.msk.f32.gmra.mrb[8].mxu1 %vm605_vm2, %v356_v34  ;;  %p1988_p3 = pnand %p1987_p2, %p1981_p13 }
  0x74   : > { %1093 = vrot.lane.b32.xlu1 %v2443_v28, %s2043_s26  ;;  %1749 = vmatprep.mubr.msk.f32.mxu1 %vm605_vm2, %v357_v35 }
  0x75   : > { %1095 = vrot.lane.b32.xlu0 %v2448_v29, %s2043_s26 }
  0x77   : > { %1750 = vmatmul.mubr.msk.f32.gmra.mrb[10].mxu1 %vm605_vm2, %v358_v38 }
  0x78   : > { %1097 = vrot.lane.b32.xlu1 %v2455_v32, %s2043_s26  ;;  %1752 = vmatprep.mubr.msk.f32.mxu1 %vm605_vm2, %v359_v39 }
  0x79   : > { %1099 = vrot.lane.b32.xlu0 %v2460_v33, %s2043_s26 }
  0x7b   : > { %1753 = vmatmul.mubr.msk.f32.gmra.mrb[12].mxu1 %vm605_vm2, %v360_v42 }
  0x7c   : > { %1101 = vrot.lane.b32.xlu1 %v2467_v36, %s2043_s26 }
  0x7d   : > { %1103 = vrot.lane.b32.xlu0 %v2472_v37, %s2043_s26 }
  0x80   : > { %1105 = vrot.lane.b32.xlu1 %v2479_v40, %s2043_s26 }
  0x81   : > { %1107 = vrot.lane.b32.xlu0 %v2484_v41, %s2043_s26 }
  0x84   : > { %1109 = vrot.lane.b32.xlu1 %v2490_v43, %s2043_s26 }
  0x85   : > { %1111 = vrot.lane.b32.xlu0 %v2494_v44, %s2043_s26 }
  0x88   : > { %1113 = vrot.lane.b32.xlu1 %v2498_v45, %s2043_s26 }
  0x89   : > { %1115 = vrot.lane.b32.xlu0 %v2502_v46, %s2043_s26 }
  0x8c   : > { %1117 = vrot.lane.b32.xlu1 %v2506_v47, %s2043_s26  ;;  %s3049_s26 = scalar_lea.sflag [#allocation3], %s313_s19 }
  0xac   : > { %v2512_v48 = vpop.xlane.xlu1 %869  ;;  %v2514_v49 = vpop.xlane.xlu0 %863 }
  0xb0   : > { %v2516_v50 = vpop.xlane.xlu1 %872  ;;  %v2518_v51 = vpop.xlane.xlu0 %866 }
  0xb4   : > { %v2520_v52 = vpop.xlane.xlu1 %878  ;;  %v2522_v53 = vpop.xlane.xlu0 %875 }
  0xb8   : > { %v2524_v54 = vpop.xlane.xlu1 %884  ;;  %v2526_v55 = vpop.xlane.xlu0 %881 }
  0xbc   : > { %v2528_v56 = vpop.xlane.xlu1 %890  ;;  %v2530_v57 = vpop.xlane.xlu0 %887 }
  0xc0   : > { %v2532_v58 = vpop.xlane.xlu1 %896  ;;  %v2534_v59 = vpop.xlane.xlu0 %893 }
  0xc4   : > { %v2536_v60 = vpop.xlane.xlu1 %902  ;;  %v2538_v61 = vpop.xlane.xlu0 %899 }
  0xc8   : > { %v2540_v62 = vpop.xlane.xlu1 %908  ;;  %v2542_v63 = vpop.xlane.xlu0 %905 }
  0xcc   : > { %v929_v0 = vpop.permute.xlu1 %928  ;;  %v927_v1 = vpop.permute.xlu0 %926 }
  0xcd   : > { %v977_v2 = vsel %vm861_vm0, %v929_v0, 0.0  ;;  %v974_v3 = vsel %vm861_vm0, %v927_v1, 0.0  ;;  %v1026_v0 = vsel %vm1022_vm3, %v2431_v24, 0.0  ;;  %v1023_v1 = vsel %vm1022_vm3, %v2424_v21, 0.0 }
  0xce   : > { %978 = vadd.xlane.f32.xlu1 %v977_v2  ;;  %975 = vadd.xlane.f32.xlu0 %v974_v3  ;;  %v1032_v2 = vsel %vm1022_vm3, %v2443_v28, 0.0  ;;  %v1029_v3 = vsel %vm1022_vm3, %v2436_v25, 0.0  ;;  %v1044_v21 = vsel %vm1022_vm3, %v2467_v36, 0.0  ;;  %v1041_v24 = vsel %vm1022_vm3, %v2460_v33, 0.0 }
  0xcf   : > { %v1050_v25 = vsel %vm1022_vm3, %v2479_v40, 0.0  ;;  %v1047_v28 = vsel %vm1022_vm3, %v2472_v37, 0.0  ;;  %v1053_v36 = vsel %vm1022_vm3, %v2484_v41, 0.0  ;;  %v1062_v40 = vsel %vm1022_vm3, %v2498_v45, 0.0 }
  0xd0   : > { %v931_v4 = vpop.permute.xlu1 %930  ;;  %v935_v5 = vpop.permute.xlu0 %934  ;;  %v1059_v37 = vsel %vm1022_vm3, %v2494_v44, 0.0 }
  0xd1   : > { %v980_v7 = vsel %vm861_vm0, %v931_v4, 0.0  ;;  %v986_v10 = vsel %vm861_vm0, %v935_v5, 0.0  ;;  %v1038_v4 = vsel %vm1022_vm3, %v2455_v32, 0.0  ;;  %v1035_v5 = vsel %vm1022_vm3, %v2448_v29, 0.0 }
  0xd2   : > { %981 = vadd.xlane.f32.xlu0 %v980_v7  ;;  %v1056_v29 = vsel %vm1022_vm3, %v2490_v43, 0.0  ;;  %v1065_v43 = vsel %vm1022_vm3, %v2502_v46, 0.0 }
  0xd4   : > { %v933_v6 = vpop.permute.xlu1 %932  ;;  %v939_v8 = vpop.permute.xlu0 %938 }
  0xd5   : > { %v983_v9 = vsel %vm861_vm0, %v933_v6, 0.0  ;;  %v992_v14 = vsel %vm861_vm0, %v939_v8, 0.0  ;;  %v1068_v8 = vsel %vm1022_vm3, %v2506_v47, 0.0 }
  0xd6   : > { %984 = vadd.xlane.f32.xlu0 %v983_v9 }
  0xd8   : > { %v937_v11 = vpop.permute.xlu1 %936  ;;  %v943_v12 = vpop.permute.xlu0 %942 }
  0xd9   : > { %v989_v13 = vsel %vm861_vm0, %v937_v11, 0.0  ;;  %v998_v18 = vsel %vm861_vm0, %v943_v12, 0.0 }
  0xda   : > { %990 = vadd.xlane.f32.xlu1 %v989_v13  ;;  %987 = vadd.xlane.f32.xlu0 %v986_v10 }
  0xdc   : > { %v941_v15 = vpop.permute.xlu1 %940  ;;  %v947_v16 = vpop.permute.xlu0 %946 }
  0xdd   : > { %v995_v17 = vsel %vm861_vm0, %v941_v15, 0.0  ;;  %v1004_v23 = vsel %vm861_vm0, %v947_v16, 0.0 }
  0xde   : > { %996 = vadd.xlane.f32.xlu1 %v995_v17  ;;  %993 = vadd.xlane.f32.xlu0 %v992_v14 }
  0xe0   : > { %v945_v19 = vpop.permute.xlu1 %944  ;;  %v951_v22 = vpop.permute.xlu0 %950 }
  0xe1   : > { %v1001_v20 = vsel %vm861_vm0, %v945_v19, 0.0  ;;  %v1010_v30 = vsel %vm861_vm0, %v951_v22, 0.0 }
  0xe2   : > { %1002 = vadd.xlane.f32.xlu1 %v1001_v20  ;;  %999 = vadd.xlane.f32.xlu0 %v998_v18 }
  0xe4   : > { %v949_v26 = vpop.permute.xlu1 %948  ;;  %v955_v34 = vpop.permute.xlu0 %954 }
  0xe5   : > { %v1007_v27 = vsel %vm861_vm0, %v949_v26, 0.0  ;;  %v1016_v38 = vsel %vm861_vm0, %v955_v34, 0.0 }
  0xe6   : > { %1008 = vadd.xlane.f32.xlu1 %v1007_v27  ;;  %1005 = vadd.xlane.f32.xlu0 %v1004_v23 }
  0xe8   : > { %v953_v31 = vpop.permute.xlu1 %952  ;;  %v1088_v32 = vpop.permute.xlu0 %1087 }
  0xe9   : > { %v1013_v35 = vsel %vm861_vm0, %v953_v31, 0.0  ;;  %v1135_v11 = vsel %vm1022_vm3, %v1088_v32, 0.0 }
  0xea   : > { %1014 = vadd.xlane.f32.xlu1 %v1013_v35  ;;  %1011 = vadd.xlane.f32.xlu0 %v1010_v30 }
  0xec   : > { %v957_v39 = vpop.permute.xlu1 %956  ;;  %v1092_v33 = vpop.permute.xlu0 %1091 }
  0xed   : > { %v1019_v42 = vsel %vm861_vm0, %v957_v39, 0.0  ;;  %v1141_v13 = vsel %vm1022_vm3, %v1092_v33, 0.0 }
  0xee   : > { %1020 = vadd.xlane.f32.xlu1 %v1019_v42  ;;  %1017 = vadd.xlane.f32.xlu0 %v1016_v38 }
  0xf0   : > { %v1090_v7 = vpop.permute.xlu1 %1089  ;;  %v1096_v9 = vpop.permute.xlu0 %1095 }
  0xf1   : > { %v1138_v10 = vsel %vm1022_vm3, %v1090_v7, 0.0  ;;  %v1147_v15 = vsel %vm1022_vm3, %v1096_v9, 0.0 }
  0xf2   : > { %1027 = vadd.xlane.f32.xlu1 %v1026_v0  ;;  %1024 = vadd.xlane.f32.xlu0 %v1023_v1 }
  0xf4   : > { %v1094_v6 = vpop.permute.xlu1 %1093  ;;  %v1100_v45 = vpop.permute.xlu0 %1099 }
  0xf5   : > { %v1144_v12 = vsel %vm1022_vm3, %v1094_v6, 0.0  ;;  %v1153_v17 = vsel %vm1022_vm3, %v1100_v45, 0.0 }
  0xf6   : > { %1033 = vadd.xlane.f32.xlu1 %v1032_v2  ;;  %1030 = vadd.xlane.f32.xlu0 %v1029_v3 }
  0xf8   : > { %v1098_v41 = vpop.permute.xlu1 %1097  ;;  %v1104_v47 = vpop.permute.xlu0 %1103 }
  0xf9   : > { %v1150_v14 = vsel %vm1022_vm3, %v1098_v41, 0.0  ;;  %v1159_v22 = vsel %vm1022_vm3, %v1104_v47, 0.0 }
  0xfa   : > { %1039 = vadd.xlane.f32.xlu1 %v1038_v4  ;;  %1036 = vadd.xlane.f32.xlu0 %v1035_v5 }
  0xfc   : > { %v1102_v44 = vpop.permute.xlu1 %1101  ;;  %v1108_v18 = vpop.permute.xlu0 %1107 }
  0xfd   : > { %v1156_v16 = vsel %vm1022_vm3, %v1102_v44, 0.0  ;;  %v1165_v30 = vsel %vm1022_vm3, %v1108_v18, 0.0  ;;  %v2608_v0 = vpop.f32.mrb[0].mxu0 }
  0xfe   : > { %1045 = vadd.xlane.f32.xlu1 %v1044_v21  ;;  %1042 = vadd.xlane.f32.xlu0 %v1041_v24  ;;  %v2610_v1 = vpop.f32.mrb[1].mxu0 }
 0x100   : > { %v1106_v46 = vpop.permute.xlu1 %1105  ;;  %v1112_v23 = vpop.permute.xlu0 %1111 }
 0x101   : > { %v1162_v20 = vsel %vm1022_vm3, %v1106_v46, 0.0  ;;  %v1171_v34 = vsel %vm1022_vm3, %v1112_v23, 0.0  ;;  %v2612_v2 = vpop.f32.mrb[2].mxu0 }
 0x102   : > { %1051 = vadd.xlane.f32.xlu1 %v1050_v25  ;;  %1048 = vadd.xlane.f32.xlu0 %v1047_v28  ;;  %v2614_v3 = vpop.f32.mrb[3].mxu0 }
 0x104   : > { %v1110_v19 = vpop.permute.xlu1 %1109  ;;  %v1116_v35 = vpop.permute.xlu0 %1115 }
 0x105   : > { %v1168_v27 = vsel %vm1022_vm3, %v1110_v19, 0.0  ;;  %v1177_v42 = vsel %vm1022_vm3, %v1116_v35, 0.0  ;;  %v2616_v4 = vpop.f32.mrb[4].mxu0 }
 0x106   : > { %1057 = vadd.xlane.f32.xlu1 %v1056_v29  ;;  %1054 = vadd.xlane.f32.xlu0 %v1053_v36  ;;  %v2618_v5 = vpop.f32.mrb[5].mxu0 }
 0x108   : > { %v1114_v26 = vpop.permute.xlu1 %1113  ;;  %v2620_v21 = vpop.f32.mrb[6].mxu0 }
 0x109   : > { %v1174_v31 = vsel %vm1022_vm3, %v1114_v26, 0.0  ;;  %v2622_v24 = vpop.f32.mrb[7].mxu0 }
 0x10a   : > { %1063 = vadd.xlane.f32.xlu1 %v1062_v40  ;;  %1060 = vadd.xlane.f32.xlu0 %v1059_v37 }
 0x10c   : > { %v1118_v38 = vpop.permute.xlu1 %1117  ;;  %v2624_v25 = vpop.f32.mrb[8].mxu0 }
 0x10d   : > { %v1180_v39 = vsel %vm1022_vm3, %v1118_v38, 0.0  ;;  %v2626_v28 = vpop.f32.mrb[9].mxu0 }
 0x10e   : > { %1069 = vadd.xlane.f32.xlu1 %v1068_v8  ;;  %1066 = vadd.xlane.f32.xlu0 %v1065_v43 }
 0x110   : > { %v2628_v32 = vpop.f32.mrb[10].mxu0 }
 0x111   : > { %v2630_v7 = vpop.f32.mrb[11].mxu0 }
 0x112   : > { %1139 = vadd.xlane.f32.xlu1 %v1138_v10  ;;  %1136 = vadd.xlane.f32.xlu0 %v1135_v11 }
 0x114   : > { %v2632_v29 = vpop.f32.mrb[12].mxu0 }
 0x115   : > { %3101 = vst [vmem:[#allocation5_spill] sm:$0xff] %v2632_v29  ;;  %v2634_v36 = vpop.f32.mrb[13].mxu0 }
 0x116   : > { %1145 = vadd.xlane.f32.xlu1 %v1144_v12  ;;  %1142 = vadd.xlane.f32.xlu0 %v1141_v13  ;;  %3102 = vst [vmem:[#allocation6_spill] sm:$0xff] %v2634_v36 }
 0x118   : > { %v2636_v33 = vpop.f32.mrb[14].mxu0 }
 0x119   : > { %3103 = vst [vmem:[#allocation7_spill] sm:$0xff] %v2636_v33  ;;  %v2638_v6 = vpop.f32.mrb[15].mxu0 }
 0x11a   : > { %1151 = vadd.xlane.f32.xlu1 %v1150_v14  ;;  %1148 = vadd.xlane.f32.xlu0 %v1147_v15  ;;  %3104 = vst [vmem:[#allocation8_spill] sm:$0xff] %v2638_v6 }
 0x11e   : > { %1157 = vadd.xlane.f32.xlu1 %v1156_v16  ;;  %1154 = vadd.xlane.f32.xlu0 %v1153_v17 }
 0x122   : > { %1163 = vadd.xlane.f32.xlu1 %v1162_v20  ;;  %1160 = vadd.xlane.f32.xlu0 %v1159_v22 }
 0x126   : > { %1169 = vadd.xlane.f32.xlu1 %v1168_v27  ;;  %1166 = vadd.xlane.f32.xlu0 %v1165_v30 }
 0x12a   : > { %1175 = vadd.xlane.f32.xlu1 %v1174_v31  ;;  %1172 = vadd.xlane.f32.xlu0 %v1171_v34 }
 0x12e   : > { %1181 = vadd.xlane.f32.xlu1 %v1180_v39  ;;  %1178 = vadd.xlane.f32.xlu0 %v1177_v42 }
 0x136   : > { %v2644_v8 = vpop.f32.mrb[0].mxu1 }
 0x137   : > { %v2640_v40 = vpop.f32.mrb[16].mxu0  ;;  %v2646_v43 = vpop.f32.mrb[1].mxu1 }
 0x138   : > { %v2642_v37 = vpop.f32.mrb[17].mxu0 }
 0x13a   : > { %v2648_v9 = vpop.f32.mrb[2].mxu1 }
 0x13b   : > { %v2650_v41 = vpop.f32.mrb[3].mxu1 }
 0x13e   : > { %v2652_v10 = vpop.f32.mrb[4].mxu1 }
 0x13f   : > { %v2654_v11 = vpop.f32.mrb[5].mxu1 }
 0x142   : > { %v2656_v45 = vpop.f32.mrb[6].mxu1 }
 0x143   : > { %v2658_v44 = vpop.f32.mrb[7].mxu1 }
 0x144   : > { %3105 = vst [vmem:[#allocation9_spill] sm:$0xff] %v2658_v44 }
 0x146   : > { %v2660_v12 = vpop.f32.mrb[8].mxu1 }
 0x147   : > { %3106 = vst [vmem:[#allocation10_spill] sm:$0xff] %v2660_v12  ;;  %v2662_v13 = vpop.f32.mrb[9].mxu1 }
 0x148   : > { %3107 = vst [vmem:[#allocation11_spill] sm:$0xff] %v2662_v13 }
 0x14a   : > { %v2664_v47 = vpop.f32.mrb[10].mxu1 }
 0x14b   : > { %3108 = vst [vmem:[#allocation12_spill] sm:$0xff] %v2664_v47  ;;  %v2666_v46 = vpop.f32.mrb[11].mxu1 }
 0x14c   : > { %3109 = vst [vmem:[#allocation13_spill] sm:$0xff] %v2666_v46 }
 0x14e   : > { %v2668_v14 = vpop.f32.mrb[12].mxu1 }
 0x14f   : > { %3110 = vst [vmem:[#allocation14_spill] sm:$0xff] %v2668_v14  ;;  %v2670_v15 = vpop.f32.mrb[13].mxu1 }
 0x150   : > { %3111 = vst [vmem:[#allocation15_spill] sm:$0xff] %v2670_v15 }
 0x15b   : > { %v2672_v16 = vpop.xlane.xlu0 %975  ;;  %v2676_v18 = vpop.xlane.xlu1 %978 }
 0x15f   : > { %v2674_v17 = vpop.xlane.xlu0 %981 }
 0x163   : > { %v2678_v19 = vpop.xlane.xlu0 %984 }
 0x167   : > { %v2680_v20 = vpop.xlane.xlu1 %990  ;;  %v2682_v22 = vpop.xlane.xlu0 %987 }
 0x16b   : > { %v2684_v23 = vpop.xlane.xlu1 %996  ;;  %v2686_v26 = vpop.xlane.xlu0 %993 }
 0x16f   : > { %v2688_v27 = vpop.xlane.xlu1 %1002  ;;  %v2690_v30 = vpop.xlane.xlu0 %999 }
 0x173   : > { %v2692_v31 = vpop.xlane.xlu1 %1008  ;;  %v2694_v34 = vpop.xlane.xlu0 %1005 }
 0x177   : > { %v2696_v35 = vpop.xlane.xlu1 %1014  ;;  %v2698_v38 = vpop.xlane.xlu0 %1011 }
 0x178   : > { %3112 = vst [vmem:[#allocation16_spill] sm:$0xff] %v2696_v35  ;;  %3113 = vst [vmem:[#allocation17_spill] sm:$0xff] %v2698_v38 }
 0x17b   : > { %v2700_v39 = vpop.xlane.xlu1 %1020  ;;  %v2702_v42 = vpop.xlane.xlu0 %1017 }
 0x17c   : > { %3114 = vst [vmem:[#allocation18_spill] sm:$0xff] %v2700_v39  ;;  %3115 = vst [vmem:[#allocation19_spill] sm:$0xff] %v2702_v42 }
 0x17f   : > { %v1028_v15 = vpop.xlane.xlu1 %1027  ;;  %v1025_v6 = vpop.xlane.xlu0 %1024 }
 0x180   : > { %v1184_v14 = vsub.f32 %v1028_v15, %v2518_v51  ;;  %v1183_v46 = vsub.f32 %v1025_v6, %v2514_v49 }
 0x182   : > { %v1201_v33 = vmul.f32 1.442695, %v1184_v14  ;;  %v1199_v13 = vmul.f32 1.442695, %v1183_v46 }
 0x183   : > { %v1034_v36 = vpop.xlane.xlu1 %1033  ;;  %v1031_v47 = vpop.xlane.xlu0 %1030 }
 0x184   : > { %v1186_v29 = vsub.f32 %v1034_v36, %v2516_v50  ;;  %v1185_v12 = vsub.f32 %v1031_v47, %v2512_v48  ;;  %1850 = vpow2.f32 %v1201_v33 }
 0x185   : > { %1852 = vpow2.f32 %v1199_v13 }
 0x186   : > { %v1205_v44 = vmul.f32 1.442695, %v1186_v29  ;;  %v1203_v38 = vmul.f32 1.442695, %v1185_v12 }
 0x187   : > { %v1040_v39 = vpop.xlane.xlu1 %1039  ;;  %v1037_v35 = vpop.xlane.xlu0 %1036 }
 0x188   : > { %v1188_v42 = vsub.f32 %v1040_v39, %v2520_v52  ;;  %v1187_v51 = vsub.f32 %v1037_v35, %v2522_v53  ;;  %1854 = vpow2.f32 %v1205_v44 }
 0x189   : > { %1856 = vpow2.f32 %v1203_v38 }
 0x18a   : > { %v1209_v49 = vmul.f32 1.442695, %v1188_v42  ;;  %v1207_v6 = vmul.f32 1.442695, %v1187_v51 }
 0x18b   : > { %v1046_v14 = vpop.xlane.xlu1 %1045  ;;  %v1043_v46 = vpop.xlane.xlu0 %1042 }
 0x18c   : > { %1858 = vpow2.f32 %v1209_v49  ;;  %v1190_v50 = vsub.f32 %v1046_v14, %v2524_v54  ;;  %v1189_v48 = vsub.f32 %v1043_v46, %v2526_v55 }
 0x18d   : > { %1860 = vpow2.f32 %v1207_v6 }
 0x18e   : > { %v1213_v29 = vmul.f32 1.442695, %v1190_v50  ;;  %v1851_v36 = vpop.eup %1850  ;;  %v1211_v33 = vmul.f32 1.442695, %v1189_v48 }
 0x18f   : > { %v1052_v12 = vpop.xlane.xlu1 %1051  ;;  %v1049_v13 = vpop.xlane.xlu0 %1048  ;;  %v1232_v47 = vadd.f32 1.0, %v1851_v36 }
 0x190   : > { %1862 = vpow2.f32 %v1213_v29  ;;  %v1192_v52 = vsub.f32 %v1052_v12, %v2528_v56  ;;  %v1191_v53 = vsub.f32 %v1049_v13, %v2530_v57  ;;  %v1853_v44 = vpop.eup %1852  ;;  %v2721_v13 = vld [vmem:[%s3094_s4] ss:$0 sm:$0xff] }
 0x191   : > { %1864 = vpow2.f32 %v1211_v33  ;;  %v1231_v49 = vadd.f32 1.0, %v1853_v44 }
 0x192   : > { %v1217_v15 = vmul.f32 1.442695, %v1192_v52  ;;  %v1855_v35 = vpop.eup %1854  ;;  %v1215_v38 = vmul.f32 1.442695, %v1191_v53 }
 0x193   : > { %v1058_v54 = vpop.xlane.xlu1 %1057  ;;  %v1055_v39 = vpop.xlane.xlu0 %1054  ;;  %v1234_v56 = vadd.f32 1.0, %v1855_v35 }
 0x194   : > { %1866 = vpow2.f32 %v1217_v15  ;;  %v1194_v55 = vsub.f32 %v1058_v54, %v2532_v58  ;;  %v1193_v42 = vsub.f32 %v1055_v39, %v2534_v59  ;;  %v1857_v51 = vpop.eup %1856 }
 0x195   : > { %1868 = vrcp.f32 %v1232_v47  ;;  %v1233_v48 = vadd.f32 1.0, %v1857_v51 }
 0x196   : > { %v1859_v6 = vpop.eup %1858  ;;  %v1221_v14 = vmul.f32 1.442695, %v1194_v55  ;;  %1870 = vpow2.f32 %v1215_v38  ;;  %v1219_v57 = vmul.f32 1.442695, %v1193_v42  ;;  %v2727_v38 = vadd.f32 %v2608_v0, %v2721_v13 }
 0x197   : > { %v1064_v46 = vpop.xlane.xlu1 %1063  ;;  %v1061_v50 = vpop.xlane.xlu0 %1060  ;;  %v1236_v58 = vadd.f32 1.0, %v1859_v6  ;;  %v2731_v55 = vadd.f32 %v2721_v13, %v2610_v1 }
 0x198   : > { %1872 = vpow2.f32 %v1221_v14  ;;  %v1196_v29 = vsub.f32 %v1064_v46, %v2536_v60  ;;  %v1195_v36 = vsub.f32 %v1061_v50, %v2538_v61  ;;  %v1861_v33 = vpop.eup %1860  ;;  %v2740_v14 = vld [vmem:[%s3095_s5] ss:$0 sm:$0xff]  ;;  %v571_v46 = vmax.f32 %v2727_v38, 0.0 }
 0x199   : > { %1874 = vrcp.f32 %v1231_v49  ;;  %v1235_v47 = vadd.f32 1.0, %v1861_v33  ;;  %v1375_v49 = vlaneseq  ;;  %v2745_v50 = vadd.f32 %v2612_v2, %v2721_v13 }
 0x19a   : > { %v1863_v59 = vpop.eup %1862  ;;  %1876 = vrcp.f32 %v1234_v56  ;;  %v1225_v12 = vmul.f32 1.442695, %v1196_v29  ;;  %v1223_v52 = vmul.f32 1.442695, %v1195_v36  ;;  %v2760_v2 = vadd.f32 %v2740_v14, %v2642_v37 }
 0x19b   : > { %1878 = vpow2.f32 %v1219_v57  ;;  %v1070_v53 = vpop.xlane.xlu1 %1069  ;;  %v1067_v44 = vpop.xlane.xlu0 %1066  ;;  %v1238_v15 = vadd.f32 1.0, %v1863_v59 }
 0x19c   : > { %1880 = vrcp.f32 %v1233_v48  ;;  %v1198_v60 = vsub.f32 %v1070_v53, %v2540_v62  ;;  %v1865_v61 = vpop.eup %1864  ;;  %v1197_v35 = vsub.f32 %v1067_v44, %v2542_v63 }
 0x19d   : > { %1882 = vrcp.f32 %v1236_v58  ;;  %v1237_v39 = vadd.f32 1.0, %v1865_v61  ;;  %v2766_v61 = vand.u32 127, %v1375_v49 }
 0x19e   : > { %v1867_v54 = vpop.eup %1866  ;;  %1884 = vpow2.f32 %v1225_v12  ;;  %v1229_v63 = vmul.f32 1.442695, %v1198_v60  ;;  %v1227_v57 = vmul.f32 1.442695, %v1197_v35  ;;  %v2756_v12 = vadd.f32 %v2640_v40, %v2740_v14 }
 0x19f   : > { %v1240_v42 = vadd.f32 1.0, %v1867_v54  ;;  %1886 = vpow2.f32 %v1223_v52  ;;  %v1140_v51 = vpop.xlane.xlu1 %1139  ;;  %v1137_v62 = vpop.xlane.xlu0 %1136  ;;  %v2774_v54 = vadd.f32 %v2616_v4, %v2721_v13  ;;  %v2784_v4 = vadd.f32 %v2721_v13, %v2618_v5 }
 0x1a0   : > { %v2733_v6 = vpop.eup %1868  ;;  %1888 = vrcp.f32 %v1235_v47  ;;  %v1280_v56 = vsub.f32 %v1140_v51, %v2676_v18  ;;  %v1279_v0 = vsub.f32 %v1137_v62, %v2672_v16  ;;  %v570_v18 = vmax.f32 %v2731_v55, 0.0  ;;  %v3123_v62 = vld [vmem:[#allocation11_spill] sm:$0xff] }
 0x1a1   : > { %v1871_v1 = vpop.eup %1870  ;;  %1890 = vrcp.f32 %v1238_v15  ;;  %v2750_v16 = vadd.f32 %v2721_v13, %v2614_v3  ;;  %v800_v51 = vmax.f32 %v2756_v12, 0.0  ;;  %vm1377_vm4 = vcmp.lt.s32.totalorder %v2766_v61, 64 }
 0x1a2   : > { %v1873_v48 = vpop.eup %1872  ;;  %1892 = vrcp.f32 %v1237_v39  ;;  %v1297_v29 = vmul.f32 1.442695, %v1280_v56  ;;  %v1295_v33 = vmul.f32 1.442695, %v1279_v0  ;;  %v1239_v53 = vadd.f32 1.0, %v1871_v1 }
 0x1a3   : > { %v2752_v36 = vpop.eup %1874  ;;  %1894 = vrcp.f32 %v1240_v42  ;;  %v1146_v58 = vpop.xlane.xlu1 %1145  ;;  %v1242_v60 = vadd.f32 1.0, %v1873_v48  ;;  %v2792_v48 = vadd.f32 %v2740_v14, %v2646_v43  ;;  %v2805_v43 = vadd.f32 %v2721_v13, %v2622_v24 }
 0x1a4   : > { %v1143_v59 = vpop.xlane.xlu0 %1142  ;;  %v2762_v52 = vpop.eup %1876  ;;  %1896 = vpow2.f32 %v1229_v63  ;;  %v1282_v3 = vsub.f32 %v1146_v58, %v2678_v19 }
 0x1a5   : > { %v1281_v44 = vsub.f32 %v1143_v59, %v2674_v17  ;;  %v1879_v47 = vpop.eup %1878  ;;  %1898 = vpow2.f32 %v1227_v57  ;;  %v2788_v57 = vadd.f32 %v2644_v8, %v2740_v14  ;;  %v2801_v8 = vadd.f32 %v2620_v21, %v2721_v13 }
 0x1a6   : > { %v2769_v15 = vpop.eup %1880  ;;  %1900 = vpow2.f32 %v1297_v29  ;;  %v1301_v37 = vmul.f32 1.442695, %v1282_v3  ;;  %v1241_v17 = vadd.f32 1.0, %v1879_v47 }
 0x1a7   : > { %v2776_v19 = vpop.eup %1882  ;;  %1902 = vpow2.f32 %v1295_v33  ;;  %v1152_v39 = vpop.xlane.xlu1 %1151  ;;  %v1299_v63 = vmul.f32 1.442695, %v1281_v44 }
 0x1a8   : > { %v1149_v42 = vpop.xlane.xlu0 %1148  ;;  %v1885_v49 = vpop.eup %1884  ;;  %1904 = vrcp.f32 %v1239_v53  ;;  %v1284_v56 = vsub.f32 %v1152_v39, %v2680_v20 }
 0x1a9   : > { %v1283_v0 = vsub.f32 %v1149_v42, %v2682_v22  ;;  %v1887_v1 = vpop.eup %1886  ;;  %1906 = vrcp.f32 %v1242_v60  ;;  %v1244_v5 = vadd.f32 1.0, %v1885_v49 }
 0x1aa   : > { %v2794_v29 = vpop.eup %1888  ;;  %1908 = vpow2.f32 %v1301_v37  ;;  %v1305_v20 = vmul.f32 1.442695, %v1284_v56  ;;  %v1243_v44 = vadd.f32 1.0, %v1887_v1 }
 0x1ab   : > { %v1303_v33 = vmul.f32 1.442695, %v1283_v0  ;;  %v2797_v58 = vpop.eup %1890  ;;  %1910 = vrcp.f32 %v1241_v17  ;;  %v1158_v59 = vpop.xlane.xlu1 %1157  ;;  %v2872_v0 = vadd.f32 %v2656_v45, %v2740_v14 }
 0x1ac   : > { %v1155_v53 = vpop.xlane.xlu0 %1154  ;;  %v2807_v3 = vpop.eup %1892  ;;  %1912 = vpow2.f32 %v1299_v63  ;;  %v1286_v47 = vsub.f32 %v1158_v59, %v2684_v23  ;;  %v2820_v63 = vadd.f32 %v2648_v9, %v2740_v14 }
 0x1ad   : > { %v1285_v60 = vsub.f32 %v1155_v53, %v2686_v26  ;;  %v2811_v37 = vpop.eup %1894  ;;  %1914 = vpow2.f32 %v1305_v20  ;;  %v2828_v20 = vadd.f32 %v2740_v14, %v2650_v41  ;;  %v2834_v53 = vadd.f32 %v2624_v25, %v2721_v13 }
 0x1ae   : > { %v2816_v42 = vpop.eup %1896  ;;  %1916 = vpow2.f32 %v1303_v33  ;;  %v1309_v24 = vmul.f32 1.442695, %v1286_v47  ;;  %v2842_v41 = vadd.f32 %v2652_v10, %v2740_v14  ;;  %v2853_v10 = vadd.f32 %v2740_v14, %v2654_v11 }
 0x1af   : > { %v1307_v49 = vmul.f32 1.442695, %v1285_v60  ;;  %v2822_v23 = vpop.eup %1898  ;;  %1918 = vrcp.f32 %v1244_v5  ;;  %v1164_v26 = vpop.xlane.xlu1 %1163  ;;  %v2838_v60 = vadd.f32 %v2721_v13, %v2626_v28 }
 0x1b0   : > { %v1161_v56 = vpop.xlane.xlu0 %1160  ;;  %v1901_v33 = vpop.eup %1900  ;;  %1920 = vrcp.f32 %v1243_v44  ;;  %v1288_v59 = vsub.f32 %v1164_v26, %v2688_v27 }
 0x1b1   : > { %v1287_v9 = vsub.f32 %v1161_v56, %v2690_v30  ;;  %v1903_v5 = vpop.eup %1902  ;;  %v1328_v47 = vadd.f32 1.0, %v1901_v33  ;;  %1922 = vpow2.f32 %v1309_v24  ;;  %v3117_v33 = vld [vmem:[#allocation17_spill] sm:$0xff] }
 0x1b2   : > { %v2844_v44 = vpop.eup %1904  ;;  %v1327_v27 = vadd.f32 1.0, %v1903_v5  ;;  %1924 = vpow2.f32 %v1307_v49  ;;  %v1313_v30 = vmul.f32 1.442695, %v1288_v59  ;;  %v3116_v49 = vld [vmem:[#allocation16_spill] sm:$0xff] }
 0x1b3   : > { %v1311_v26 = vmul.f32 1.442695, %v1287_v9  ;;  %v2846_v56 = vpop.eup %1906  ;;  %1926 = vrcp.f32 %v1328_v47  ;;  %v1170_v25 = vpop.xlane.xlu1 %1169 }
 0x1b4   : > { %v1167_v24 = vpop.xlane.xlu0 %1166  ;;  %v1909_v1 = vpop.eup %1908  ;;  %1928 = vrcp.f32 %v1327_v27  ;;  %v1290_v59 = vsub.f32 %v1170_v25, %v2692_v31  ;;  %v2864_v27 = vadd.f32 %v2628_v32, %v2721_v13  ;;  %v2868_v31 = vadd.f32 %v2721_v13, %v2630_v7 }
 0x1b5   : > { %v1289_v9 = vsub.f32 %v1167_v24, %v2694_v34  ;;  %v2858_v5 = vpop.eup %1910  ;;  %v1330_v47 = vadd.f32 1.0, %v1909_v1  ;;  %1930 = vpow2.f32 %v1313_v30 }
 0x1b6   : > { %v1913_v28 = vpop.eup %1912  ;;  %1932 = vpow2.f32 %v1311_v26  ;;  %v1317_v11 = vmul.f32 1.442695, %v1290_v59 }
 0x1b7   : > { %v1915_v34 = vpop.eup %1914  ;;  %1934 = vrcp.f32 %v1330_v47  ;;  %v1329_v25 = vadd.f32 1.0, %v1913_v28  ;;  %v1315_v1 = vmul.f32 1.442695, %v1289_v9  ;;  %v1176_v30 = vpop.xlane.xlu1 %1175  ;;  %v3118_v9 = vld [vmem:[#allocation9_spill] sm:$0xff]  ;;  %v3119_v28 = vld [vmem:[#allocation10_spill] sm:$0xff] }
 0x1b8   : > { %v1173_v24 = vpop.xlane.xlu0 %1172  ;;  %v1917_v26 = vpop.eup %1916  ;;  %v1332_v59 = vadd.f32 1.0, %v1915_v34  ;;  %1936 = vpow2.f32 %v1317_v11  ;;  %v1292_v32 = vsub.f32 %v1176_v30, %v3116_v49  ;;  %v2881_v47 = vadd.f32 %v2740_v14, %v3118_v9  ;;  %v3121_v49 = vld [vmem:[#allocation19_spill] sm:$0xff] }
 0x1b9   : > { %v1291_v39 = vsub.f32 %v1173_v24, %v3117_v33  ;;  %v2876_v17 = vpop.eup %1918  ;;  %1938 = vrcp.f32 %v1329_v25  ;;  %v1331_v7 = vadd.f32 1.0, %v1917_v26  ;;  %v2890_v9 = vadd.f32 %v3119_v28, %v2740_v14 }
 0x1ba   : > { %v2883_v45 = vpop.eup %1920  ;;  %1940 = vrcp.f32 %v1332_v59  ;;  %v1321_v34 = vmul.f32 1.442695, %v1292_v32  ;;  %v3120_v59 = vld [vmem:[#allocation18_spill] sm:$0xff]  ;;  %v807_v26 = vmax.f32 %v2881_v47, 0.0 }
 0x1bb   : > { %v1923_v33 = vpop.eup %1922  ;;  %1942 = vrcp.f32 %v1331_v7  ;;  %v1319_v30 = vmul.f32 1.442695, %v1291_v39  ;;  %v1182_v25 = vpop.xlane.xlu1 %1181  ;;  %v3122_v39 = vld [vmem:[#allocation5_spill] sm:$0xff] }
 0x1bc   : > { %v1179_v24 = vpop.xlane.xlu0 %1178  ;;  %v1925_v21 = vpop.eup %1924  ;;  %v1334_v22 = vadd.f32 1.0, %v1923_v33  ;;  %1944 = vpow2.f32 %v1315_v1  ;;  %v1294_v11 = vsub.f32 %v1182_v25, %v3120_v59  ;;  %v2897_v40 = vadd.f32 %v3122_v39, %v2721_v13 }
 0x1bd   : > { %v1293_v32 = vsub.f32 %v1179_v24, %v3121_v49  ;;  %v1927_v35 = vpop.eup %1926  ;;  %v1333_v7 = vadd.f32 1.0, %v1925_v21  ;;  %1946 = vpow2.f32 %v1321_v34  ;;  %v2905_v25 = vadd.f32 %v2740_v14, %v3123_v62 }
 0x1be   : > { %v1929_v28 = vpop.eup %1928  ;;  %v1381_v1 = vsel %vm1377_vm4, %v2733_v6, %v1927_v35  ;;  %1948 = vrcp.f32 %v1334_v22  ;;  %v1325_v33 = vmul.f32 1.442695, %v1294_v11  ;;  %v810_v24 = vmax.f32 %v2890_v9, 0.0 }
 0x1bf   : > { %v1931_v49 = vpop.eup %1930  ;;  %v1380_v21 = vsel %vm1377_vm4, %v2752_v36, %v1929_v28  ;;  %1950 = vrcp.f32 %v1333_v7  ;;  %v1413_v34 = vsub.f32 1.0, %v1381_v1  ;;  %v1323_v22 = vmul.f32 1.442695, %v1293_v32 }
 0x1c0   : > { %v1933_v59 = vpop.eup %1932  ;;  %v1336_v6 = vadd.f32 1.0, %v1931_v49  ;;  %1952 = vpow2.f32 %v1319_v30  ;;  %v1412_v35 = vsub.f32 1.0, %v1380_v21  ;;  %v1397_v62 = vmul.f32 %v1381_v1, %v571_v46 }
 0x1c1   : > { %v1935_v11 = vpop.eup %1934  ;;  %v1335_v39 = vadd.f32 1.0, %v1933_v59  ;;  %v1429_v36 = vmul.f32 %v1413_v34, %v800_v51  ;;  %1954 = vpow2.f32 %v1325_v33  ;;  %v1396_v28 = vmul.f32 %v1380_v21, %v570_v18 }
 0x1c2   : > { %v1937_v7 = vpop.eup %1936  ;;  %v1383_v49 = vsel %vm1377_vm4, %v2762_v52, %v1935_v11  ;;  %1956 = vrcp.f32 %v1336_v6  ;;  %v3124_v30 = vmax.f32 %v2760_v2, 0.0  ;;  %v3125_v46 = vmax.f32 %v2745_v50, 0.0 }
 0x1c3   : > { %v1939_v38 = vpop.eup %1938  ;;  %1958 = vrcp.f32 %v1335_v39  ;;  %v1338_v12 = vadd.f32 1.0, %v1937_v7  ;;  %v1445_v51 = vadd.f32 %v1429_v36, %v1397_v62  ;;  %v1415_v52 = vsub.f32 1.0, %v1383_v49 }
 0x1c4   : > { %v1428_v32 = vmul.f32 %v1412_v35, %v3124_v30  ;;  %v1399_v1 = vmul.f32 %v1383_v49, %v3125_v46  ;;  %v1941_v33 = vpop.eup %1940  ;;  %v1382_v55 = vsel %vm1377_vm4, %v2769_v15, %v1939_v38  ;;  %1960 = vpow2.f32 %v1323_v22 }
 0x1c5   : > { %v1943_v21 = vpop.eup %1942  ;;  %v3126_v2 = vmax.f32 %v2750_v16, 0.0  ;;  %v1385_v50 = vsel %vm1377_vm4, %v2776_v19, %v1941_v33  ;;  %1962 = vrcp.f32 %v1338_v12  ;;  %1461 = vst [vmem:[%s2937_s21 + $0x8] sm:$0xff] %v1445_v51  ;;  %v1414_v59 = vsub.f32 1.0, %v1382_v55 }
 0x1c6   : > { %v1444_v18 = vadd.f32 %v1428_v32, %v1396_v28  ;;  %v1945_v6 = vpop.eup %1944  ;;  %v3127_v15 = vmax.f32 %v2774_v54, 0.0  ;;  %v1384_v16 = vsel %vm1377_vm4, %v2794_v29, %v1943_v21  ;;  %v3128_v22 = vmax.f32 %v2788_v57, 0.0 }
 0x1c7   : > { %v1398_v34 = vmul.f32 %v1382_v55, %v3126_v2  ;;  %v1417_v19 = vsub.f32 1.0, %v1385_v50  ;;  %v1947_v62 = vpop.eup %1946  ;;  %v3129_v39 = vmax.f32 %v2784_v4, 0.0  ;;  %v1337_v7 = vadd.f32 1.0, %v1945_v6 }
 0x1c8   : > { %v1401_v35 = vmul.f32 %v1385_v50, %v3127_v15  ;;  %1460 = vst [vmem:[%s2937_s21] sm:$0xff] %v1444_v18  ;;  %v1431_v11 = vmul.f32 %v1415_v52, %v3128_v22  ;;  %v3130_v28 = vmax.f32 %v2792_v48, 0.0  ;;  %v1416_v54 = vsub.f32 1.0, %v1384_v16  ;;  %v1949_v30 = vpop.eup %1948 }
 0x1c9   : > { %v1400_v36 = vmul.f32 %v1384_v16, %v3129_v39  ;;  %v1246_v32 = vadd.f32 1.0, %v2816_v42  ;;  %v1340_v38 = vadd.f32 1.0, %v1947_v62  ;;  %v3131_v46 = vmax.f32 %v2820_v63, 0.0  ;;  %v1951_v12 = vpop.eup %1950  ;;  %v3136_v16 = vld [vmem:[#allocation12_spill] sm:$0xff] }
 0x1ca   : > { %v1430_v49 = vmul.f32 %v1414_v59, %v3130_v28  ;;  %v1447_v29 = vadd.f32 %v1431_v11, %v1399_v1  ;;  %v1387_v4 = vsel %vm1377_vm4, %v2797_v58, %v1949_v30  ;;  %1964 = vrcp.f32 %v1337_v7  ;;  %v1953_v55 = vpop.eup %1952 }
 0x1cb   : > { %v1433_v57 = vmul.f32 %v1417_v19, %v3131_v46  ;;  %v3132_v48 = vmax.f32 %v2828_v20, 0.0  ;;  %v3133_v18 = vmax.f32 %v2801_v8, 0.0  ;;  %v1386_v63 = vsel %vm1377_vm4, %v2807_v3, %v1951_v12  ;;  %v1955_v52 = vpop.eup %1954 }
 0x1cc   : > { %v1446_v51 = vadd.f32 %v1430_v49, %v1398_v34  ;;  %1966 = vrcp.f32 %v1340_v38  ;;  %1463 = vst [vmem:[%s2937_s21 + $0x18] sm:$0xff] %v1447_v29  ;;  %v3134_v58 = vmax.f32 %v2805_v43, 0.0  ;;  %v1339_v2 = vadd.f32 1.0, %v1953_v55  ;;  %v1957_v50 = vpop.eup %1956 }
 0x1cd   : > { %v1432_v33 = vmul.f32 %v1416_v54, %v3132_v48  ;;  %v1403_v42 = vmul.f32 %v1387_v4, %v3133_v18  ;;  %v1449_v1 = vadd.f32 %v1433_v57, %v1401_v35  ;;  %v1419_v34 = vsub.f32 1.0, %v1387_v4  ;;  %v1959_v3 = vpop.eup %1958  ;;  %v3142_v57 = vld [vmem:[#allocation6_spill] sm:$0xff] }
 0x1ce   : > { %v1402_v21 = vmul.f32 %v1386_v63, %v3134_v58  ;;  %1462 = vst [vmem:[%s2937_s21 + $0x10] sm:$0xff] %v1446_v51  ;;  %1968 = vrcp.f32 %v1246_v32  ;;  %v1245_v8 = vadd.f32 1.0, %v2822_v23  ;;  %v1342_v59 = vadd.f32 1.0, %v1955_v52  ;;  %v1961_v11 = vpop.eup %1960  ;;  %v3143_v51 = vld [vmem:[#allocation7_spill] sm:$0xff] }
 0x1cf   : > { %v1448_v20 = vadd.f32 %v1432_v33, %v1400_v36  ;;  %1465 = vst [vmem:[%s2937_s21 + $0x28] sm:$0xff] %v1449_v1  ;;  %v1418_v6 = vsub.f32 1.0, %v1386_v63  ;;  %v1389_v15 = vsel %vm1377_vm4, %v2811_v37, %v1957_v50  ;;  %1970 = vrcp.f32 %v1339_v2  ;;  %v1963_v36 = vpop.eup %1962  ;;  %v3147_v50 = vld [vmem:[#allocation8_spill] sm:$0xff] }
 0x1d0   : > { %v3135_v43 = vmax.f32 %v2842_v41, 0.0  ;;  %v786_v22 = vadd.f32 %v3136_v16, %v2740_v14  ;;  %v3137_v19 = vmax.f32 %v2834_v53, 0.0  ;;  %v1388_v62 = vsel %vm1377_vm4, %v2844_v44, %v1959_v3 }
 0x1d1   : > { %1464 = vst [vmem:[%s2937_s21 + $0x20] sm:$0xff] %v1448_v20  ;;  %1972 = vrcp.f32 %v1342_v59  ;;  %v3138_v37 = vmax.f32 %v2853_v10, 0.0  ;;  %v3139_v41 = vmax.f32 %v2838_v60, 0.0  ;;  %v1341_v28 = vadd.f32 1.0, %v1961_v11 }
 0x1d2   : > { %v1435_v35 = vmul.f32 %v1419_v34, %v3135_v43  ;;  %v1405_v23 = vmul.f32 %v1389_v15, %v3137_v19  ;;  %v1421_v54 = vsub.f32 1.0, %v1389_v15  ;;  %1974 = vrcp.f32 %v1245_v8 }
 0x1d3   : > { %v1434_v39 = vmul.f32 %v1418_v6, %v3138_v37  ;;  %v1404_v7 = vmul.f32 %v1388_v62, %v3139_v41  ;;  %v1391_v53 = vsel %vm1377_vm4, %v2846_v56, %v1963_v36  ;;  %v1420_v32 = vsub.f32 1.0, %v1388_v62  ;;  %v3148_v6 = vld [vmem:[#allocation15_spill] sm:$0xff] }
 0x1d4   : > { %v1451_v49 = vadd.f32 %v1435_v35, %v1403_v42  ;;  %v3140_v44 = vmax.f32 %v2864_v27, 0.0  ;;  %1976 = vrcp.f32 %v1341_v28  ;;  %v3141_v10 = vmax.f32 %v2872_v0, 0.0  ;;  %v1965_v27 = vpop.eup %1964  ;;  %v3145_v42 = vld [vmem:[#allocation14_spill] sm:$0xff] }
 0x1d5   : > { %v1450_v30 = vadd.f32 %v1434_v39, %v1402_v21  ;;  %v1423_v29 = vsub.f32 1.0, %v1391_v53  ;;  %v583_v46 = vmax.f32 %v2897_v40, 0.0  ;;  %v552_v12 = vadd.f32 %v2721_v13, %v3142_v57  ;;  %v3144_v40 = vld [vmem:[#allocation13_spill] sm:$0xff] }
 0x1d6   : > { %v1407_v38 = vmul.f32 %v1391_v53, %v3140_v44  ;;  %1467 = vst [vmem:[%s2937_s21 + $0x38] sm:$0xff] %v1451_v49  ;;  %v1437_v60 = vmul.f32 %v1421_v54, %v3141_v10  ;;  %v1436_v56 = vmul.f32 %v1420_v32, %v807_v26  ;;  %v809_v4 = vmax.f32 %v2905_v25, 0.0  ;;  %v1967_v18 = vpop.eup %1966 }
 0x1d7   : > { %1466 = vst [vmem:[%s2937_s21 + $0x30] sm:$0xff] %v1450_v30  ;;  %v567_v48 = vadd.f32 %v3143_v51, %v2721_v13  ;;  %v1439_v33 = vmul.f32 %v1423_v29, %v810_v24  ;;  %v781_v55 = vadd.f32 %v2740_v14, %v3144_v40  ;;  %v1390_v47 = vsel %vm1377_vm4, %v2858_v5, %v1965_v27 }
 0x1d8   : > { %v1453_v0 = vadd.f32 %v1437_v60, %v1405_v23  ;;  %v1452_v26 = vadd.f32 %v1436_v56, %v1404_v7  ;;  %v812_v25 = vmax.f32 %v786_v22, 0.0  ;;  %v796_v63 = vadd.f32 %v3145_v42, %v2740_v14  ;;  %v1969_v21 = vpop.eup %1968 }
 0x1d9   : > { %v3146_v1 = vmax.f32 %v2868_v31, 0.0  ;;  %v1455_v9 = vadd.f32 %v1439_v33, %v1407_v38  ;;  %v1422_v24 = vsub.f32 1.0, %v1390_v47  ;;  %v1393_v58 = vsel %vm1377_vm4, %v2876_v17, %v1967_v18  ;;  %v1971_v34 = vpop.eup %1970 }
 0x1da   : > { %1469 = vst [vmem:[%s2937_s21 + $0x48] sm:$0xff] %v1453_v0  ;;  %v582_v2 = vmax.f32 %v552_v12, 0.0  ;;  %1468 = vst [vmem:[%s2937_s21 + $0x40] sm:$0xff] %v1452_v26  ;;  %v1409_v5 = vmul.f32 %v1393_v58, %v583_v46  ;;  %v1425_v20 = vsub.f32 1.0, %v1393_v58  ;;  %v562_v8 = vadd.f32 %v2721_v13, %v3147_v50 }
 0x1db   : > { %v1406_v52 = vmul.f32 %v1390_v47, %v3146_v1  ;;  %1471 = vst [vmem:[%s2937_s21 + $0x58] sm:$0xff] %v1455_v9  ;;  %v1438_v59 = vmul.f32 %v1422_v24, %v809_v4  ;;  %v811_v31 = vmax.f32 %v781_v55, 0.0  ;;  %v791_v3 = vadd.f32 %v2740_v14, %v3148_v6  ;;  %v1973_v15 = vpop.eup %1972 }
 0x1dc   : > { %v585_v43 = vmax.f32 %v567_v48, 0.0  ;;  %v1441_v35 = vmul.f32 %v1425_v20, %v812_v25  ;;  %v1392_v17 = vsel %vm1377_vm4, %v2883_v45, %v1971_v34  ;;  %v814_v16 = vmax.f32 %v796_v63, 0.0  ;;  %v1975_v23 = vpop.eup %1974 }
 0x1dd   : > { %v1454_v22 = vadd.f32 %v1438_v59, %v1406_v52  ;;  %v1408_v11 = vmul.f32 %v1392_v17, %v582_v2  ;;  %v1424_v19 = vsub.f32 1.0, %v1392_v17  ;;  %v1395_v13 = vsel %vm1377_vm4, %v1969_v21, %v1973_v15 }
 0x1de   : > { %v1457_v14 = vadd.f32 %v1441_v35, %v1409_v5  ;;  %v1411_v62 = vmul.f32 %v1395_v13, %v585_v43  ;;  %v1427_v37 = vsub.f32 1.0, %v1395_v13  ;;  %v1977_v39 = vpop.eup %1976  ;;  %v584_v36 = vmax.f32 %v562_v8, 0.0 }
 0x1df   : > { %1470 = vst [vmem:[%s2937_s21 + $0x50] sm:$0xff] %v1454_v22  ;;  %v1440_v41 = vmul.f32 %v1424_v19, %v811_v31  ;;  %v813_v45 = vmax.f32 %v791_v3, 0.0  ;;  %v1394_v28 = vsel %vm1377_vm4, %v1975_v23, %v1977_v39 }
 0x1e0   : > { %1473 = vst [vmem:[%s2937_s21 + $0x68] sm:$0xff] %v1457_v14  ;;  %v1443_v7 = vmul.f32 %v1427_v37, %v814_v16  ;;  %v1410_v54 = vmul.f32 %v1394_v28, %v584_v36  ;;  %v1426_v53 = vsub.f32 1.0, %v1394_v28 }
 0x1e1   : > { %v1456_v49 = vadd.f32 %v1440_v41, %v1408_v11 }
 0x1e2   : > { %v1459_v30 = vadd.f32 %v1443_v7, %v1411_v62  ;;  %v1442_v32 = vmul.f32 %v1426_v53, %v813_v45 }
 0x1e3   : > { %1472 = vst [vmem:[%s2937_s21 + $0x60] sm:$0xff] %v1456_v49 }
 0x1e4   : > { %1475 = vst [vmem:[%s2937_s21 + $0x78] sm:$0xff] %v1459_v30  ;;  %v1458_v61 = vadd.f32 %v1442_v32, %v1410_v54 }
 0x1e6   : > { %1474 = vst [vmem:[%s2937_s21 + $0x70] sm:$0xff] %v1458_v61 }
 0x1e7   : > { %1991 = shalt.err (!%p1988_p3)
}
 0x1e8   : > { %s1992_s13 = scalar_lea.hbm %s3042_s18, 2048  ;;  %s1996_s21 = scalar_lea.hbm %s3098_s8, 8192 }
 0x1e9   : > { %p1993_p4 = scmp.ne.s32.totalorder %s3042_s18, %s1992_s13  ;;  %p1997_p9 = scmp.lt.u32.totalorder %s3042_s18, %s3098_s8 }
 0x1ea   : > { %p1998_p10 = scmp.lt.u32.totalorder %s1996_s21, %s1992_s13  ;;  %p2000_p12 = scmp.lt.u32.totalorder %s1992_s13, %s3042_s18 }
 0x1eb   : > { %p1994_p7 = pnand %p1993_p4, %p2130_p5 }
 0x1ec   : > { %p1999_p11 = por %p1998_p10, %p1997_p9 }
 0x1ed   : > { %p1995_p8 = pneg %p1994_p7 }
 0x1ee   : > { %p2001_p13 = por %p2000_p12, %p1999_p11 }
 0x1f0   : > { %p2002_p0 = pnand %p2001_p13, %p1995_p8 }
 0x1f2   : > { %2005 = shalt.err (!%p2002_p0)
}
 0x1f3   : > { %s2045_s17 = smov 128   ;;  %s2046_s9 = smov 8  }
 0x1f4   : > { %1807 = dma.vmem_to_hbm [thread:$0]  (%p2130_p5), %s3044_s24, 2048, %s3042_s18, %s3049_s26, %s2045_s17, %s2045_s17, %s2046_s9  }
 0x1f5 PF: > { %p1813_p1 = scmp.ge.s32.totalorder %s2040_s30, 2  ;;  %s1505_s22 = sand.u32 1, %s2028_s27  }
 0x1f6   : > { %s1506_s10 = scalar_lea.sflag [#allocation3], %s1505_s22 }
 0x1f7   : > { %p1810_p2 = pnand %p1813_p1, %p2134_p6 }
 0x1f9   : > { %2023 = dma.done.wait (!%p1810_p2), %s1506_s10, 2048  }
 0x1fa   : > { %2025 = vsyncadd (!%p1810_p2), %s1506_s10, 4294965248  ;;  %p18_p3 = scmp.ge.s32.totalorder %s2117_s11, 6   ;;  %s3149_s27 = smov %s2032_s28 }
 0x1fb   : > { %s3150_s28 = smov %s2036_s29  ;;  %s3151_s29 = smov %s2128_s14 }
 0x1fc   : > { %s3152_s30 = smov %s2117_s11  ;;  %20 = sbr.rel (!%p18_p3) target bundleno = 3 (0x3), region = 90 }
 0x203   :  { %1511 = vsyncpa [#allocation3], 1 }
 0x204   :  { %1513 = vsyncpa [#allocation3 + $0x1], 1 }

</bundles_post_ra>
